<compile_context>
chip_gen: v6e
topology: v6e:2x2x1
jax: 0.10.0
libtpu: 0.0.40
codegen_flags: <defaults>
</compile_context>

<pallas_src>
import jax
import jax.numpy as jnp
from jax.experimental import pallas as pl
from jax.experimental.pallas import tpu as pltpu

IN_FEATURES = 162          # 18 * 9, as in the PyTorch module
OUT_FEATURES = 1
PADDED_IN = 256            # lane-aligned (multiple of 128) feature width
TILE_N = 1024              # rows per grid step (multiple of 8)
MIN_PALLAS_BATCH = 512     # below this, plain XLA matvec is strictly faster


def linear_kernel(x_ref, w_ref, b_ref, o_ref):
    # x_ref: (TILE_N, PADDED_IN) f32 VMEM tile
    # w_ref: (PADDED_IN, 1)      f32 VMEM (resident across the grid)
    # b_ref: (1, 1)              f32 SMEM scalar
    # o_ref: (TILE_N, 1)         f32 VMEM tile
    acc = jnp.dot(x_ref[...], w_ref[...], preferred_element_type=jnp.float32)
    o_ref[...] = (acc + b_ref[0, 0]).astype(o_ref.dtype)


def _linear_forward_pallas(x, w_t, b, *, tile_n=TILE_N):
    n, f = x.shape
    assert f == IN_FEATURES and w_t.shape == (IN_FEATURES, OUT_FEATURES)

    # One-time, host-side layout fix: zero-pad the feature dim to 256 lanes.
    x_p = jnp.pad(x, ((0, 0), (0, PADDED_IN - f)))
    w_p = jnp.pad(w_t, ((0, PADDED_IN - f), (0, 0)))
    b2 = jnp.reshape(b, (1, 1)).astype(jnp.float32)

    grid = (pl.cdiv(n, tile_n),)
    return pl.pallas_call(
        linear_kernel,
        out_shape=jax.ShapeDtypeStruct((n, OUT_FEATURES), x.dtype),
        grid=grid,
        in_specs=[
            # Streamed batch tiles of x (auto double-buffered by Pallas).
            pl.BlockSpec((tile_n, PADDED_IN), lambda i: (i, 0)),
            # Weight: same block every step -> stays resident in VMEM.
            pl.BlockSpec((PADDED_IN, OUT_FEATURES), lambda i: (0, 0)),
            # Bias: single scalar in SMEM.
            pl.BlockSpec((1, 1), lambda i: (0, 0),
                         memory_space=pltpu.MemorySpace.SMEM),
        ],
        out_specs=pl.BlockSpec((tile_n, OUT_FEATURES), lambda i: (i, 0)),
        compiler_params=pltpu.CompilerParams(
            dimension_semantics=("parallel",),  # v7x: shard tiles across 2 TCs
        ),
    )(x_p, w_p, b2)


def linear_forward(x, w_t, b, *, tile_n=TILE_N):
    """Forward pass of LinearRegressionModel: y = x @ W^T + b."""
    if x.shape[0] < MIN_PALLAS_BATCH:
        # Dispatch/grid overhead dominates at tiny batch; plain XLA wins.
        return x @ w_t + jnp.reshape(b, (1, OUT_FEATURES))
    return _linear_forward_pallas(x, w_t, b, tile_n=tile_n)


if __name__ == "__main__":
    key = jax.random.PRNGKey(0)
    kx, kw, kb = jax.random.split(key, 3)

    # Batch matching the module's data: x has shape (12 * 471, 18 * 9).
    N = 12 * 471  # 5652 rows -> 6 grid steps at TILE_N=1024, last one ragged
    x = jax.random.normal(kx, (N, IN_FEATURES), dtype=jnp.float32)

    # Deterministic params mimicking torch.nn.Linear default init
    # (uniform in [-1/sqrt(fan_in), 1/sqrt(fan_in)]), stored as W^T (162, 1).
    bound = 1.0 / (IN_FEATURES ** 0.5)
    w_t = jax.random.uniform(
        kw, (IN_FEATURES, OUT_FEATURES), minval=-bound, maxval=bound,
        dtype=jnp.float32)
    b = jax.random.uniform(
        kb, (1, OUT_FEATURES), minval=-bound, maxval=bound, dtype=jnp.float32)

    # Pallas kernel path (batch >= MIN_PALLAS_BATCH).
    y = _linear_forward_pallas(x, w_t, b)
    jax.block_until_ready(y)

    # Reference in plain JAX (same math as nn.Linear forward).
    y_ref = x @ w_t + b
    assert y.shape == (N, OUT_FEATURES)
    assert jnp.allclose(y, y_ref, atol=1e-5, rtol=1e-5)

    # Also sanity-check the small-batch fallback path of the public wrapper.
    y_small = linear_forward(x[:8], w_t, b)
    jax.block_until_ready(y_small)
    assert jnp.allclose(y_small, y_ref[:8], atol=1e-5, rtol=1e-5)

    print("KERNEL_OK")
</pallas_src>

<mosaic_0001>
module attributes {stable_mosaic.version = 11 : i64} {
  func.func @linear_kernel(%arg0: i32, %arg1: memref<1024x256xf32, #tpu.memory_space<vmem>>, %arg2: memref<256x1xf32, #tpu.memory_space<vmem>>, %arg3: memref<1x1xf32, #tpu.memory_space<smem>>, %arg4: memref<1024x1xf32, #tpu.memory_space<vmem>>) attributes {dimension_semantics = [#tpu.dimension_semantics<parallel>], iteration_bounds = array<i64: 6>, scalar_prefetch = 0 : i64, scratch_operands = 0 : i64, tpu.core_type = #tpu.core_type<tc>, window_params = [{transform_indices = @transform_0, window_bounds = array<i64: 1024, 256>}, {pipeline_mode = #tpu.pipeline_mode<synchronous>, transform_indices = @transform_1, window_bounds = array<i64: 256, 1>}, {transform_indices = @transform_2, window_bounds = array<i64: 1, 1>}, {transform_indices = @transform_3, window_bounds = array<i64: 1024, 1>}]} {
    %c0 = arith.constant 0 : index
    %c0_0 = arith.constant 0 : index
    %0 = vector.load %arg1[%c0, %c0_0] : memref<1024x256xf32, #tpu.memory_space<vmem>>, vector<1024x256xf32>
    %c0_1 = arith.constant 0 : index
    %c0_2 = arith.constant 0 : index
    %1 = vector.load %arg2[%c0_1, %c0_2] : memref<256x1xf32, #tpu.memory_space<vmem>>, vector<256x1xf32>
    %cst = arith.constant dense<0.000000e+00> : vector<1024x1xf32>
    %2 = tpu.matmul %0, %1, %cst {dimension_numbers = #tpu.dot_dimension_numbers<[1], [0], [0], [1], [0, 0, 1, 1], [], []>} : vector<1024x256xf32>, vector<256x1xf32>, vector<1024x1xf32> -> vector<1024x1xf32>
    %c0_3 = arith.constant 0 : index
    %c0_4 = arith.constant 0 : index
    %3 = memref.load %arg3[%c0_3, %c0_4] : memref<1x1xf32, #tpu.memory_space<smem>>
    %4 = vector.broadcast %3 : f32 to vector<1024x1xf32>
    %5 = arith.addf %2, %4 : vector<1024x1xf32>
    %c0_5 = arith.constant 0 : index
    %c0_6 = arith.constant 0 : index
    %6 = vector.load %arg4[%c0_5, %c0_6] : memref<1024x1xf32, #tpu.memory_space<vmem>>, vector<1024x1xf32>
    tpu.vector_store %arg4[%c0_5, %c0_6], %5 {strides = array<i32>} : memref<1024x1xf32, #tpu.memory_space<vmem>>, vector<1024x1xf32>,
    return
  }
  func.func @transform_0(%arg0: i32) -> (i32, i32) {
    %c0_i32 = arith.constant 0 : i32
    %c0_i32_0 = arith.constant 0 : i32
    return %arg0, %c0_i32 : i32, i32
  }
  func.func @transform_1(%arg0: i32) -> (i32, i32) {
    %c0_i32 = arith.constant 0 : i32
    %c0_i32_0 = arith.constant 0 : i32
    %c0_i32_1 = arith.constant 0 : i32
    return %c0_i32, %c0_i32_0 : i32, i32
  }
  func.func @transform_2(%arg0: i32) -> (i32, i32) {
    %c0_i32 = arith.constant 0 : i32
    %c0_i32_0 = arith.constant 0 : i32
    %c0_i32_1 = arith.constant 0 : i32
    return %c0_i32, %c0_i32_0 : i32, i32
  }
  func.func @transform_3(%arg0: i32) -> (i32, i32) {
    %c0_i32 = arith.constant 0 : i32
    %c0_i32_0 = arith.constant 0 : i32
    return %arg0, %c0_i32 : i32, i32
  }
}

</mosaic_0001>

<bundles_post_ra>
// kernel: tpu_custom_call.1
= control target key start
LH: loop header
LB: loop body
LE: loop exit
PB: predicated region body
PF: predicated region fallthrough
CT: control target
= control target key end

     0   :  { %s3276_s0 = inlined_call_operand.hbm [shape: f32[5652,256], index: 0, kind: input, shape index: {}]   ;;  %s3277_s1 = inlined_call_operand.vmem [shape: f32[256,1], index: 1, kind: input, shape index: {}]   ;;  %s3278_s2 = inlined_call_operand.<no memory space> [shape: f32[1,1], index: 2, kind: input, shape index: {}]   ;;  %s3279_s3 = inlined_call_operand.vmem [shape: f32[5652,1], index: 3, kind: output, shape index: {}]  }
   0x1   :  { %8 = sst [smem:[#allocation2]] %s3278_s2 }
   0x2   :  { %9 = vsyncpa [#allocation4], 0 }
   0x3   :  { %11 = vsyncpa [#allocation4 + $0x1], 0  ;;  %s2163_s14 = smov 0   ;;  %s2165_s15 = smov 0  }
   0x4   :  { %s2167_s16 = smov 0   ;;  %s2169_s17 = smov 0  }
   0x5 LB: > { %s2182_s2 = sadd.s32 4294967295, %s2102_s17   ;;  %s2185_s18 = sadd.s32 1, %s2102_s17   ;;  %s2102_s17 = sphi %s2169_s17, %s3290_s17   ;;  %s2098_s16 = sphi %s2167_s16, %s3289_s16   ;;  %s2094_s15 = sphi %s2165_s15, %s3288_s15   ;;  %s2090_s14 = sphi %s2163_s14, %s3287_s14  }
   0x6   : > { %s21_s19 = ssub.s32 %s2102_s17, %s2185_s18  ;;  %s24_s20 = sadd.s32 1, %s2098_s16 }
   0x7   : > { %p22_p0 = scmp.eq.s32.totalorder %s21_s19, 0  ;;  %p31_p1 = scmp.ne.s32.totalorder %s2098_s16, %s2094_s15 }
   0x8   : > { %p32_p2 = scmp.eq.s32.totalorder %s2102_s17, 0  ;;  %p37_p3 = scmp.ne.s32.totalorder %s2094_s15, %s2090_s14 }
   0x9   : > { %s2195_s21 = scalar_select %p22_p0, %s2098_s16, %s24_s20  }
   0xa   : > { %p33_p4 = por %p32_p2, %p31_p1  ;;  %p38_p5 = scmp.eq.s32.totalorder %s2182_s2, 0 }
   0xb   : > { %p103_p6 = scmp.eq.s32.totalorder %s2182_s2, 5  ;;  %p1810_p9 = scmp.ge.s32.totalorder %s2102_s17, 6 }
   0xc   : > { %p2199_p7 = por %p38_p5, %p37_p3 }
   0xd   : > { %p2203_p8 = por %p103_p6, %p31_p1  ;;  %131 = sbr.rel (%p1810_p9) target bundleno = 50 (0x32), region = 24 }
  0x12   : > { %134 = sbr.rel (!%p33_p4) target bundleno = 50 (0x32), region = 28  ;;  %s135_s24 = sand.u32 (%p33_p4), 1, %s2098_s16  }
  0x13   : > { %s1812_s25 = sshll.u32 (%p33_p4), %s2102_s17, 7  ;;  %s1811_s26 = sshll.u32 (%p33_p4), %s135_s24, 11 }
  0x14   : > { %s141_s27 = ssub.s32 (%p33_p4), 707, %s1812_s25  ;;  %s2213_s30 = scalar_lea.sflag (%p33_p4), [#allocation4], %s135_s24 }
  0x15   : > { %p142_p10 = scmp.lt.s32.totalorder (%p33_p4), %s141_s27, 128  ;;  %s139_s4 = scalar_lea.vmem (%p33_p4), [#allocation3], %s1811_s26 }
  0x17   : > { %s3292_s27 = smov (!%p142_p10, %s141_s27), 128 }
  0x18   : > { %s2210_s28 = sshll.u32 %s3292_s27, 8 }
  0x19   : > { %s147_s29 = ssub.s32 32768, %s2210_s28 }
  0x1a   : > { %148 = vsyncadd %s2213_s30, %s147_s29  ;;  %p1815_p11 = scmp.ne.s32.totalorder %s2210_s28, 0  ;;  %s1842_s5 = sshll.u32 %s2102_s17, 15 }
  0x1b   : > { %s2221_s8 = scalar_lea.hbm %s3276_s0, %s1842_s5  ;;  %s154_s9 = sshll.u32 %s139_s4, 4  ;;  %s2223_s9 = int_to_ptr.vmem [resolvable:$true] %s154_s9 }
  0x1c   : > { %s2010_s10 = scalar_lea.hbm %s2221_s8, %s2210_s28  ;;  %s2014_s13 = scalar_lea.hbm %s3276_s0, 180992 }
  0x1d   : > { %p2011_p12 = scmp.ne.s32.totalorder %s2221_s8, %s2010_s10  ;;  %p2015_p1 = scmp.lt.s32.totalorder %s2221_s8, %s3276_s0 }
  0x1e   : > { %p2016_p2 = scmp.lt.s32.totalorder %s2014_s13, %s2010_s10 }
  0x1f   : > { %p2012_p13 = pnand %p2011_p12, %p1815_p11 }
  0x20   : > { %p2017_p3 = por %p2016_p2, %p2015_p1 }
  0x21   : > { %p2013_p0 = pneg %p2012_p13 }
  0x23   : > { %p2018_p4 = pnand %p2017_p3, %p2013_p0 }
  0x25   : > { %2021 = shalt.err (!%p2018_p4)
}
  0x26   : > { %s2022_s20 = scalar_lea.vmem %s2223_s9, %s2210_s28  ;;  %s2136_s24 = smov [#allocation3]  }
  0x27   : > { %p2023_p5 = scmp.ne.s32.totalorder %s2223_s9, %s2022_s20  ;;  %s2026_s25 = sshll.u32 %s2136_s24, 4  ;;  %s2027_s25 = int_to_ptr.vmem [resolvable:$false] %s2026_s25 }
  0x28   : > { %s2028_s26 = scalar_lea.vmem %s2027_s25, 65536  ;;  %p2029_p10 = scmp.lt.s32.totalorder %s2223_s9, %s2027_s25 }
  0x29   : > { %p2024_p6 = pnand %p2023_p5, %p1815_p11  ;;  %p2030_p12 = scmp.lt.s32.totalorder %s2028_s26, %s2022_s20 }
  0x2b   : > { %p2025_p9 = pneg %p2024_p6  ;;  %p2031_p13 = por %p2030_p12, %p2029_p10 }
  0x2d   : > { %p2032_p1 = pnand %p2031_p13, %p2025_p9 }
  0x2f   : > { %2035 = shalt.err (!%p2032_p1)
}
  0x30   : > { %s2137_s27 = smov 256   ;;  %s2138_s29 = smov 16  }
  0x31   : > { %160 = dma.hbm_to_vmem [thread:$0]  (%p1815_p11), %s2221_s8, %s2210_s28, %s2223_s9, %s2213_s30, %s2137_s27, %s2137_s27, %s2138_s29  }
  0x32 PF: > { %p1820_p0 = scmp.ge.s32.totalorder %s2102_s17, 1  ;;  %p162_p2 = scmp.lt.s32.totalorder %s2102_s17, 7 }
  0x34   : > { %p163_p3 = pnand %p1820_p0, %p162_p2 }
  0x35   : > { %s2252_s4 = sand.u32 (!%p163_p3), 1, %s2094_s15  }
  0x36   : > { %166 = sbr.rel (%p163_p3) target bundleno = 638 (0x27e), region = 32  ;;  %s1821_s5 = sshll.u32 (!%p163_p3), %s2252_s4, 11 }
  0x37   : > { %s169_s6 = scalar_lea.sflag (!%p163_p3), [#allocation4], %s2252_s4  ;;  %s2256_s7 = scalar_lea.vmem (!%p163_p3), [#allocation3], %s1821_s5 }
  0x3b   : > { %2085 = dma.done.wait (%p2199_p7), %s169_s6, 32768  }
  0x3c   : > { %2087 = vsyncadd (%p2199_p7), %s169_s6, 4294934528  ;;  %v2139_v0 = vmov 0.0   ;;  %v476_v1 = vld [vmem:[%s3277_s1 + $0x78] sm:$0xff]  ;;  %v475_v2 = vld [vmem:[%s3277_s1 + $0x70] sm:$0xff]  ;;  %s493_s22 = sld [smem:[#allocation2]]  ;;  %s1822_s9 = sshll.u32 %s2252_s4, 10 }
  0x3d   : > { %495 = vmatprep.subr.mxu0 %v2139_v0  ;;  %1846 = vmatprep.subr.mxu1 %v2139_v0  ;;  %v474_v3 = vld [vmem:[%s3277_s1 + $0x68] sm:$0xff]  ;;  %v473_v4 = vld [vmem:[%s3277_s1 + $0x60] sm:$0xff]  ;;  %v472_v5 = vld [vmem:[%s3277_s1 + $0x58] sm:$0xff]  ;;  %vm1200_vm0 = vcmask 7168   ;;  %s2629_s4 = scalar_lea.vmem [#allocation5], %s1822_s9   ;;  %s1843_s10 = sshll.u32 (%p2203_p8), %s2182_s2, 10 }
  0x3e   : > { %496 = vmatpush1.msra.mxu0 %v476_v1  ;;  %1878 = vmatpush1.msra.mxu1 %v476_v1  ;;  %v471_v6 = vld [vmem:[%s3277_s1 + $0x50] sm:$0xff]  ;;  %v470_v7 = vld [vmem:[%s3277_s1 + $0x48] sm:$0xff]  ;;  %v469_v8 = vld [vmem:[%s3277_s1 + $0x40] sm:$0xff]  ;;  %s3074_s14 = scalar_lea.vmem (%p2203_p8), %s3279_s3, %s1843_s10  }
  0x3f   : > { %497 = vmatprep.subr.mxu0 %v2139_v0  ;;  %1847 = vmatprep.subr.mxu1 %v2139_v0  ;;  %v468_v9 = vld [vmem:[%s3277_s1 + $0x38] sm:$0xff]  ;;  %v467_v10 = vld [vmem:[%s3277_s1 + $0x30] sm:$0xff]  ;;  %v466_v11 = vld [vmem:[%s3277_s1 + $0x28] sm:$0xff] }
  0x40   : > { %498 = vmatpush1.msra.mxu0 %v475_v2  ;;  %1879 = vmatpush1.msra.mxu1 %v475_v2  ;;  %v465_v12 = vld [vmem:[%s3277_s1 + $0x20] sm:$0xff]  ;;  %v464_v13 = vld [vmem:[%s3277_s1 + $0x18] sm:$0xff]  ;;  %v463_v14 = vld [vmem:[%s3277_s1 + $0x10] sm:$0xff] }
  0x41   : > { %499 = vmatprep.subr.mxu0 %v2139_v0  ;;  %1848 = vmatprep.subr.mxu1 %v2139_v0  ;;  %v462_v15 = vld [vmem:[%s3277_s1 + $0x8] sm:$0xff]  ;;  %v461_v16 = vld [vmem:[%s3277_s1] sm:$0xff]  ;;  %v492_v17 = vld [vmem:[%s3277_s1 + $0xf8] sm:$0xff] }
  0x42   : > { %500 = vmatpush1.msra.mxu0 %v474_v3  ;;  %1880 = vmatpush1.msra.mxu1 %v474_v3  ;;  %v491_v18 = vld [vmem:[%s3277_s1 + $0xf0] sm:$0xff]  ;;  %v490_v19 = vld [vmem:[%s3277_s1 + $0xe8] sm:$0xff]  ;;  %v489_v20 = vld [vmem:[%s3277_s1 + $0xe0] sm:$0xff] }
  0x43   : > { %501 = vmatprep.subr.mxu0 %v2139_v0  ;;  %1849 = vmatprep.subr.mxu1 %v2139_v0  ;;  %v488_v21 = vld [vmem:[%s3277_s1 + $0xd8] sm:$0xff]  ;;  %v487_v22 = vld [vmem:[%s3277_s1 + $0xd0] sm:$0xff]  ;;  %v486_v23 = vld [vmem:[%s3277_s1 + $0xc8] sm:$0xff] }
  0x44   : > { %502 = vmatpush1.msra.mxu0 %v473_v4  ;;  %1881 = vmatpush1.msra.mxu1 %v473_v4  ;;  %v485_v24 = vld [vmem:[%s3277_s1 + $0xc0] sm:$0xff]  ;;  %v484_v25 = vld [vmem:[%s3277_s1 + $0xb8] sm:$0xff]  ;;  %v483_v26 = vld [vmem:[%s3277_s1 + $0xb0] sm:$0xff] }
  0x45   : > { %503 = vmatprep.subr.mxu0 %v2139_v0  ;;  %1850 = vmatprep.subr.mxu1 %v2139_v0  ;;  %v482_v27 = vld [vmem:[%s3277_s1 + $0xa8] sm:$0xff]  ;;  %v481_v28 = vld [vmem:[%s3277_s1 + $0xa0] sm:$0xff]  ;;  %v480_v29 = vld [vmem:[%s3277_s1 + $0x98] sm:$0xff] }
  0x46   : > { %504 = vmatpush1.msra.mxu0 %v472_v5  ;;  %1882 = vmatpush1.msra.mxu1 %v472_v5  ;;  %v479_v30 = vld [vmem:[%s3277_s1 + $0x90] sm:$0xff]  ;;  %v478_v31 = vld [vmem:[%s3277_s1 + $0x88] sm:$0xff]  ;;  %v477_v32 = vld [vmem:[%s3277_s1 + $0x80] sm:$0xff] }
  0x47   : > { %505 = vmatprep.subr.mxu0 %v2139_v0  ;;  %1851 = vmatprep.subr.mxu1 %v2139_v0  ;;  %v206_v33 = vld [vmem:[%s2256_s7 + $0x8] sm:$0xff]  ;;  %v205_v35 = vld [vmem:[%s2256_s7] sm:$0xff]  ;;  %v208_v37 = vld [vmem:[%s2256_s7 + $0x18] sm:$0xff] }
  0x48   : > { %506 = vmatpush1.msra.mxu0 %v471_v6  ;;  %1883 = vmatpush1.msra.mxu1 %v471_v6  ;;  %v334_v34 = vld [vmem:[%s2256_s7 + $0x408] sm:$0xff]  ;;  %v333_v36 = vld [vmem:[%s2256_s7 + $0x400] sm:$0xff]  ;;  %v336_v38 = vld [vmem:[%s2256_s7 + $0x418] sm:$0xff] }
  0x49   : > { %507 = vmatprep.subr.mxu0 %v2139_v0  ;;  %1852 = vmatprep.subr.mxu1 %v2139_v0  ;;  %v207_v39 = vld [vmem:[%s2256_s7 + $0x10] sm:$0xff]  ;;  %v210_v41 = vld [vmem:[%s2256_s7 + $0x28] sm:$0xff]  ;;  %v209_v43 = vld [vmem:[%s2256_s7 + $0x20] sm:$0xff] }
  0x4a   : > { %508 = vmatpush1.msra.mxu0 %v470_v7  ;;  %1884 = vmatpush1.msra.mxu1 %v470_v7  ;;  %v335_v40 = vld [vmem:[%s2256_s7 + $0x410] sm:$0xff]  ;;  %v338_v42 = vld [vmem:[%s2256_s7 + $0x428] sm:$0xff]  ;;  %v337_v44 = vld [vmem:[%s2256_s7 + $0x420] sm:$0xff] }
  0x4b   : > { %509 = vmatprep.subr.mxu0 %v2139_v0  ;;  %1853 = vmatprep.subr.mxu1 %v2139_v0  ;;  %v212_v45 = vld [vmem:[%s2256_s7 + $0x38] sm:$0xff]  ;;  %v211_v47 = vld [vmem:[%s2256_s7 + $0x30] sm:$0xff]  ;;  %v214_v49 = vld [vmem:[%s2256_s7 + $0x48] sm:$0xff] }
  0x4c   : > { %510 = vmatpush1.msra.mxu0 %v469_v8  ;;  %1885 = vmatpush1.msra.mxu1 %v469_v8  ;;  %v340_v46 = vld [vmem:[%s2256_s7 + $0x438] sm:$0xff]  ;;  %v339_v48 = vld [vmem:[%s2256_s7 + $0x430] sm:$0xff]  ;;  %v342_v50 = vld [vmem:[%s2256_s7 + $0x448] sm:$0xff] }
  0x4d   : > { %511 = vmatprep.subr.mxu0 %v2139_v0  ;;  %1854 = vmatprep.subr.mxu1 %v2139_v0  ;;  %v213_v51 = vld [vmem:[%s2256_s7 + $0x40] sm:$0xff]  ;;  %v216_v53 = vld [vmem:[%s2256_s7 + $0x58] sm:$0xff]  ;;  %v215_v55 = vld [vmem:[%s2256_s7 + $0x50] sm:$0xff] }
  0x4e   : > { %512 = vmatpush1.msra.mxu0 %v468_v9  ;;  %1886 = vmatpush1.msra.mxu1 %v468_v9  ;;  %v341_v52 = vld [vmem:[%s2256_s7 + $0x440] sm:$0xff]  ;;  %v344_v54 = vld [vmem:[%s2256_s7 + $0x458] sm:$0xff]  ;;  %v343_v56 = vld [vmem:[%s2256_s7 + $0x450] sm:$0xff] }
  0x4f   : > { %513 = vmatprep.subr.mxu0 %v2139_v0  ;;  %1855 = vmatprep.subr.mxu1 %v2139_v0  ;;  %v218_v57 = vld [vmem:[%s2256_s7 + $0x68] sm:$0xff]  ;;  %v217_v59 = vld [vmem:[%s2256_s7 + $0x60] sm:$0xff]  ;;  %v220_v61 = vld [vmem:[%s2256_s7 + $0x78] sm:$0xff] }
  0x50   : > { %514 = vmatpush1.msra.mxu0 %v467_v10  ;;  %1887 = vmatpush1.msra.mxu1 %v467_v10  ;;  %v346_v58 = vld [vmem:[%s2256_s7 + $0x468] sm:$0xff]  ;;  %v345_v60 = vld [vmem:[%s2256_s7 + $0x460] sm:$0xff]  ;;  %v348_v62 = vld [vmem:[%s2256_s7 + $0x478] sm:$0xff] }
  0x51   : > { %515 = vmatprep.subr.mxu0 %v2139_v0  ;;  %1856 = vmatprep.subr.mxu1 %v2139_v0  ;;  %v219_v63 = vld [vmem:[%s2256_s7 + $0x70] sm:$0xff]  ;;  %v222_v1 = vld [vmem:[%s2256_s7 + $0x88] sm:$0xff]  ;;  %v221_v3 = vld [vmem:[%s2256_s7 + $0x80] sm:$0xff] }
  0x52   : > { %516 = vmatpush1.msra.mxu0 %v466_v11  ;;  %1888 = vmatpush1.msra.mxu1 %v466_v11  ;;  %v350_v2 = vld [vmem:[%s2256_s7 + $0x488] sm:$0xff]  ;;  %v349_v4 = vld [vmem:[%s2256_s7 + $0x480] sm:$0xff]  ;;  %v224_v5 = vld [vmem:[%s2256_s7 + $0x98] sm:$0xff] }
  0x53   : > { %517 = vmatprep.subr.mxu0 %v2139_v0  ;;  %1857 = vmatprep.subr.mxu1 %v2139_v0  ;;  %v352_v6 = vld [vmem:[%s2256_s7 + $0x498] sm:$0xff]  ;;  %v223_v7 = vld [vmem:[%s2256_s7 + $0x90] sm:$0xff]  ;;  %v226_v9 = vld [vmem:[%s2256_s7 + $0xa8] sm:$0xff] }
  0x54   : > { %518 = vmatpush1.msra.mxu0 %v465_v12  ;;  %1889 = vmatpush1.msra.mxu1 %v465_v12  ;;  %v351_v8 = vld [vmem:[%s2256_s7 + $0x490] sm:$0xff]  ;;  %v354_v10 = vld [vmem:[%s2256_s7 + $0x4a8] sm:$0xff]  ;;  %v225_v11 = vld [vmem:[%s2256_s7 + $0xa0] sm:$0xff] }
  0x55   : > { %519 = vmatprep.subr.mxu0 %v2139_v0  ;;  %1858 = vmatprep.subr.mxu1 %v2139_v0  ;;  %v353_v12 = vld [vmem:[%s2256_s7 + $0x4a0] sm:$0xff] }
  0x56   : > { %520 = vmatpush1.msra.mxu0 %v464_v13  ;;  %1890 = vmatpush1.msra.mxu1 %v464_v13  ;;  %v228_v13 = vld [vmem:[%s2256_s7 + $0xb8] sm:$0xff] }
  0x57   : > { %521 = vmatprep.subr.mxu0 %v2139_v0  ;;  %1859 = vmatprep.subr.mxu1 %v2139_v0 }
  0x58   : > { %522 = vmatpush1.msra.mxu0 %v463_v14  ;;  %1891 = vmatpush1.msra.mxu1 %v463_v14  ;;  %v356_v14 = vld [vmem:[%s2256_s7 + $0x4b8] sm:$0xff] }
  0x59   : > { %523 = vmatprep.subr.mxu0 %v2139_v0  ;;  %1860 = vmatprep.subr.mxu1 %v2139_v0 }
  0x5a   : > { %524 = vmatpush1.msra.mxu0 %v462_v15  ;;  %1892 = vmatpush1.msra.mxu1 %v462_v15  ;;  %v227_v15 = vld [vmem:[%s2256_s7 + $0xb0] sm:$0xff] }
  0x5b   : > { %525 = vmatprep.subr.mxu0 %v2139_v0  ;;  %1861 = vmatprep.subr.mxu1 %v2139_v0 }
  0x5c   : > { %526 = vmatpush1.msra.mxu0 %v461_v16  ;;  %1893 = vmatpush1.msra.mxu1 %v461_v16  ;;  %v355_v16 = vld [vmem:[%s2256_s7 + $0x4b0] sm:$0xff] }
  0x5d   : > { %527 = vmatprep.subr.mxu0 %v2139_v0  ;;  %1862 = vmatprep.subr.mxu1 %v2139_v0 }
  0x5e   : > { %528 = vmatpush2.msra.mxu0 %v492_v17  ;;  %1894 = vmatpush2.msra.mxu1 %v492_v17  ;;  %v230_v17 = vld [vmem:[%s2256_s7 + $0xc8] sm:$0xff] }
  0x5f   : > { %529 = vmatprep.subr.mxu0 %v2139_v0  ;;  %1863 = vmatprep.subr.mxu1 %v2139_v0 }
  0x60   : > { %530 = vmatpush2.msra.mxu0 %v491_v18  ;;  %1895 = vmatpush2.msra.mxu1 %v491_v18  ;;  %v358_v18 = vld [vmem:[%s2256_s7 + $0x4c8] sm:$0xff] }
  0x61   : > { %531 = vmatprep.subr.mxu0 %v2139_v0  ;;  %1864 = vmatprep.subr.mxu1 %v2139_v0 }
  0x62   : > { %532 = vmatpush2.msra.mxu0 %v490_v19  ;;  %1896 = vmatpush2.msra.mxu1 %v490_v19  ;;  %v229_v19 = vld [vmem:[%s2256_s7 + $0xc0] sm:$0xff] }
  0x63   : > { %533 = vmatprep.subr.mxu0 %v2139_v0  ;;  %1865 = vmatprep.subr.mxu1 %v2139_v0 }
  0x64   : > { %534 = vmatpush2.msra.mxu0 %v489_v20  ;;  %1897 = vmatpush2.msra.mxu1 %v489_v20  ;;  %v357_v20 = vld [vmem:[%s2256_s7 + $0x4c0] sm:$0xff] }
  0x65   : > { %535 = vmatprep.subr.mxu0 %v2139_v0  ;;  %1866 = vmatprep.subr.mxu1 %v2139_v0 }
  0x66   : > { %536 = vmatpush2.msra.mxu0 %v488_v21  ;;  %1898 = vmatpush2.msra.mxu1 %v488_v21  ;;  %v232_v21 = vld [vmem:[%s2256_s7 + $0xd8] sm:$0xff] }
  0x67   : > { %537 = vmatprep.subr.mxu0 %v2139_v0  ;;  %1867 = vmatprep.subr.mxu1 %v2139_v0 }
  0x68   : > { %538 = vmatpush2.msra.mxu0 %v487_v22  ;;  %1899 = vmatpush2.msra.mxu1 %v487_v22  ;;  %v360_v22 = vld [vmem:[%s2256_s7 + $0x4d8] sm:$0xff] }
  0x69   : > { %539 = vmatprep.subr.mxu0 %v2139_v0  ;;  %1868 = vmatprep.subr.mxu1 %v2139_v0 }
  0x6a   : > { %540 = vmatpush2.msra.mxu0 %v486_v23  ;;  %1900 = vmatpush2.msra.mxu1 %v486_v23  ;;  %v231_v23 = vld [vmem:[%s2256_s7 + $0xd0] sm:$0xff] }
  0x6b   : > { %541 = vmatprep.subr.mxu0 %v2139_v0  ;;  %1869 = vmatprep.subr.mxu1 %v2139_v0 }
  0x6c   : > { %542 = vmatpush2.msra.mxu0 %v485_v24  ;;  %1901 = vmatpush2.msra.mxu1 %v485_v24  ;;  %v359_v24 = vld [vmem:[%s2256_s7 + $0x4d0] sm:$0xff] }
  0x6d   : > { %543 = vmatprep.subr.mxu0 %v2139_v0  ;;  %1870 = vmatprep.subr.mxu1 %v2139_v0 }
  0x6e   : > { %544 = vmatpush2.msra.mxu0 %v484_v25  ;;  %1902 = vmatpush2.msra.mxu1 %v484_v25  ;;  %v234_v25 = vld [vmem:[%s2256_s7 + $0xe8] sm:$0xff] }
  0x6f   : > { %545 = vmatprep.subr.mxu0 %v2139_v0  ;;  %1871 = vmatprep.subr.mxu1 %v2139_v0 }
  0x70   : > { %546 = vmatpush2.msra.mxu0 %v483_v26  ;;  %1903 = vmatpush2.msra.mxu1 %v483_v26  ;;  %v362_v26 = vld [vmem:[%s2256_s7 + $0x4e8] sm:$0xff] }
  0x71   : > { %547 = vmatprep.subr.mxu0 %v2139_v0  ;;  %1872 = vmatprep.subr.mxu1 %v2139_v0 }
  0x72   : > { %548 = vmatpush2.msra.mxu0 %v482_v27  ;;  %1904 = vmatpush2.msra.mxu1 %v482_v27  ;;  %v233_v27 = vld [vmem:[%s2256_s7 + $0xe0] sm:$0xff] }
  0x73   : > { %549 = vmatprep.subr.mxu0 %v2139_v0  ;;  %1873 = vmatprep.subr.mxu1 %v2139_v0 }
  0x74   : > { %550 = vmatpush2.msra.mxu0 %v481_v28  ;;  %1905 = vmatpush2.msra.mxu1 %v481_v28  ;;  %v361_v28 = vld [vmem:[%s2256_s7 + $0x4e0] sm:$0xff] }
  0x75   : > { %551 = vmatprep.subr.mxu0 %v2139_v0  ;;  %1874 = vmatprep.subr.mxu1 %v2139_v0 }
  0x76   : > { %552 = vmatpush2.msra.mxu0 %v480_v29  ;;  %1906 = vmatpush2.msra.mxu1 %v480_v29  ;;  %v236_v29 = vld [vmem:[%s2256_s7 + $0xf8] sm:$0xff] }
  0x77   : > { %553 = vmatprep.subr.mxu0 %v2139_v0  ;;  %1875 = vmatprep.subr.mxu1 %v2139_v0 }
  0x78   : > { %554 = vmatpush2.msra.mxu0 %v479_v30  ;;  %1907 = vmatpush2.msra.mxu1 %v479_v30  ;;  %v364_v30 = vld [vmem:[%s2256_s7 + $0x4f8] sm:$0xff] }
  0x79   : > { %555 = vmatprep.subr.mxu0 %v2139_v0  ;;  %1876 = vmatprep.subr.mxu1 %v2139_v0 }
  0x7a   : > { %556 = vmatpush2.msra.mxu0 %v478_v31  ;;  %1908 = vmatpush2.msra.mxu1 %v478_v31  ;;  %v235_v31 = vld [vmem:[%s2256_s7 + $0xf0] sm:$0xff] }
  0x7b   : > { %557 = vmatprep.subr.mxu0 %v2139_v0  ;;  %1877 = vmatprep.subr.mxu1 %v2139_v0  ;;  %v347_v0 = vld [vmem:[%s2256_s7 + $0x470] sm:$0xff] }
  0x7c   : > { %558 = vmatpush2.msra.mxu0 %v477_v32  ;;  %1909 = vmatpush2.msra.mxu1 %v477_v32  ;;  %v363_v32 = vld [vmem:[%s2256_s7 + $0x4f0] sm:$0xff] }
  0x7d   : > { %559 = vmatprep.mubr.f32.mxu0 %v206_v33  ;;  %879 = vmatprep.mubr.f32.mxu1 %v334_v34  ;;  %v238_v33 = vld [vmem:[%s2256_s7 + $0x108] sm:$0xff] }
  0x7e   : > { %560 = vmatmul.mubr.f32.vlgmr.msra.gmra.mxu0 %v205_v35  ;;  %880 = vmatmul.mubr.f32.vlgmr.msra.gmra.mxu1 %v333_v36  ;;  %v366_v34 = vld [vmem:[%s2256_s7 + $0x508] sm:$0xff]  ;;  %v237_v35 = vld [vmem:[%s2256_s7 + $0x100] sm:$0xff] }
  0x7f   : > { %564 = vmatprep.mubr.f32.mxu0 %v208_v37  ;;  %884 = vmatprep.mubr.f32.mxu1 %v336_v38  ;;  %v365_v36 = vld [vmem:[%s2256_s7 + $0x500] sm:$0xff]  ;;  %v240_v37 = vld [vmem:[%s2256_s7 + $0x118] sm:$0xff] }
  0x80   : > { %v368_v38 = vld [vmem:[%s2256_s7 + $0x518] sm:$0xff] }
  0x82   : > { %565 = vmatmul.mubr.f32.gmra.mxu0 %v207_v39  ;;  %885 = vmatmul.mubr.f32.gmra.mxu1 %v335_v40  ;;  %v239_v39 = vld [vmem:[%s2256_s7 + $0x110] sm:$0xff] }
  0x83   : > { %569 = vmatprep.mubr.f32.mxu0 %v210_v41  ;;  %889 = vmatprep.mubr.f32.mxu1 %v338_v42  ;;  %v367_v40 = vld [vmem:[%s2256_s7 + $0x510] sm:$0xff]  ;;  %v242_v41 = vld [vmem:[%s2256_s7 + $0x128] sm:$0xff] }
  0x84   : > { %v370_v42 = vld [vmem:[%s2256_s7 + $0x528] sm:$0xff] }
  0x86   : > { %570 = vmatmul.mubr.f32.gmra.mxu0 %v209_v43  ;;  %890 = vmatmul.mubr.f32.gmra.mxu1 %v337_v44  ;;  %v241_v43 = vld [vmem:[%s2256_s7 + $0x120] sm:$0xff] }
  0x87   : > { %574 = vmatprep.mubr.f32.mxu0 %v212_v45  ;;  %894 = vmatprep.mubr.f32.mxu1 %v340_v46  ;;  %v369_v44 = vld [vmem:[%s2256_s7 + $0x520] sm:$0xff]  ;;  %v244_v45 = vld [vmem:[%s2256_s7 + $0x138] sm:$0xff] }
  0x88   : > { %v372_v46 = vld [vmem:[%s2256_s7 + $0x538] sm:$0xff] }
  0x8a   : > { %575 = vmatmul.mubr.f32.gmra.mxu0 %v211_v47  ;;  %895 = vmatmul.mubr.f32.gmra.mxu1 %v339_v48  ;;  %v243_v47 = vld [vmem:[%s2256_s7 + $0x130] sm:$0xff] }
  0x8b   : > { %579 = vmatprep.mubr.f32.mxu0 %v214_v49  ;;  %899 = vmatprep.mubr.f32.mxu1 %v342_v50  ;;  %v371_v48 = vld [vmem:[%s2256_s7 + $0x530] sm:$0xff]  ;;  %v246_v49 = vld [vmem:[%s2256_s7 + $0x148] sm:$0xff] }
  0x8c   : > { %v374_v50 = vld [vmem:[%s2256_s7 + $0x548] sm:$0xff] }
  0x8e   : > { %580 = vmatmul.mubr.f32.gmra.mxu0 %v213_v51  ;;  %900 = vmatmul.mubr.f32.gmra.mxu1 %v341_v52  ;;  %v245_v51 = vld [vmem:[%s2256_s7 + $0x140] sm:$0xff] }
  0x8f   : > { %584 = vmatprep.mubr.f32.mxu0 %v216_v53  ;;  %904 = vmatprep.mubr.f32.mxu1 %v344_v54  ;;  %v373_v52 = vld [vmem:[%s2256_s7 + $0x540] sm:$0xff]  ;;  %v248_v53 = vld [vmem:[%s2256_s7 + $0x158] sm:$0xff] }
  0x90   : > { %v376_v54 = vld [vmem:[%s2256_s7 + $0x558] sm:$0xff] }
  0x92   : > { %585 = vmatmul.mubr.f32.gmra.mxu0 %v215_v55  ;;  %905 = vmatmul.mubr.f32.gmra.mxu1 %v343_v56  ;;  %v247_v55 = vld [vmem:[%s2256_s7 + $0x150] sm:$0xff] }
  0x93   : > { %589 = vmatprep.mubr.f32.mxu0 %v218_v57  ;;  %909 = vmatprep.mubr.f32.mxu1 %v346_v58  ;;  %v375_v56 = vld [vmem:[%s2256_s7 + $0x550] sm:$0xff]  ;;  %v250_v57 = vld [vmem:[%s2256_s7 + $0x168] sm:$0xff] }
  0x94   : > { %v378_v58 = vld [vmem:[%s2256_s7 + $0x568] sm:$0xff] }
  0x96   : > { %590 = vmatmul.mubr.f32.gmra.mxu0 %v217_v59  ;;  %910 = vmatmul.mubr.f32.gmra.mxu1 %v345_v60  ;;  %v249_v59 = vld [vmem:[%s2256_s7 + $0x160] sm:$0xff] }
  0x97   : > { %594 = vmatprep.mubr.f32.mxu0 %v220_v61  ;;  %914 = vmatprep.mubr.f32.mxu1 %v348_v62  ;;  %v377_v60 = vld [vmem:[%s2256_s7 + $0x560] sm:$0xff]  ;;  %v252_v61 = vld [vmem:[%s2256_s7 + $0x178] sm:$0xff] }
  0x98   : > { %v380_v62 = vld [vmem:[%s2256_s7 + $0x578] sm:$0xff] }
  0x9a   : > { %595 = vmatmul.mubr.f32.gmra.mxu0 %v219_v63  ;;  %915 = vmatmul.mubr.f32.gmra.mxu1 %v347_v0  ;;  %v251_v63 = vld [vmem:[%s2256_s7 + $0x170] sm:$0xff] }
  0x9b   : > { %599 = vmatprep.mubr.f32.mxu0 %v222_v1  ;;  %919 = vmatprep.mubr.f32.mxu1 %v350_v2  ;;  %v379_v0 = vld [vmem:[%s2256_s7 + $0x570] sm:$0xff]  ;;  %v254_v1 = vld [vmem:[%s2256_s7 + $0x188] sm:$0xff] }
  0x9c   : > { %v382_v2 = vld [vmem:[%s2256_s7 + $0x588] sm:$0xff] }
  0x9e   : > { %600 = vmatmul.mubr.f32.gmra.mxu0 %v221_v3  ;;  %920 = vmatmul.mubr.f32.gmra.mxu1 %v349_v4  ;;  %v253_v3 = vld [vmem:[%s2256_s7 + $0x180] sm:$0xff] }
  0x9f   : > { %604 = vmatprep.mubr.f32.mxu0 %v224_v5  ;;  %924 = vmatprep.mubr.f32.mxu1 %v352_v6  ;;  %v381_v4 = vld [vmem:[%s2256_s7 + $0x580] sm:$0xff]  ;;  %v256_v5 = vld [vmem:[%s2256_s7 + $0x198] sm:$0xff] }
  0xa0   : > { %v384_v6 = vld [vmem:[%s2256_s7 + $0x598] sm:$0xff] }
  0xa2   : > { %605 = vmatmul.mubr.f32.gmra.mxu0 %v223_v7  ;;  %925 = vmatmul.mubr.f32.gmra.mxu1 %v351_v8  ;;  %v255_v7 = vld [vmem:[%s2256_s7 + $0x190] sm:$0xff] }
  0xa3   : > { %609 = vmatprep.mubr.f32.mxu0 %v226_v9  ;;  %929 = vmatprep.mubr.f32.mxu1 %v354_v10  ;;  %v383_v8 = vld [vmem:[%s2256_s7 + $0x590] sm:$0xff]  ;;  %v258_v9 = vld [vmem:[%s2256_s7 + $0x1a8] sm:$0xff] }
  0xa4   : > { %v386_v10 = vld [vmem:[%s2256_s7 + $0x5a8] sm:$0xff] }
  0xa6   : > { %610 = vmatmul.mubr.f32.gmra.mxu0 %v225_v11  ;;  %930 = vmatmul.mubr.f32.gmra.mxu1 %v353_v12  ;;  %v257_v11 = vld [vmem:[%s2256_s7 + $0x1a0] sm:$0xff] }
  0xa7   : > { %614 = vmatprep.mubr.f32.mxu0 %v228_v13  ;;  %934 = vmatprep.mubr.f32.mxu1 %v356_v14  ;;  %v385_v12 = vld [vmem:[%s2256_s7 + $0x5a0] sm:$0xff]  ;;  %v260_v13 = vld [vmem:[%s2256_s7 + $0x1b8] sm:$0xff] }
  0xa8   : > { %v388_v14 = vld [vmem:[%s2256_s7 + $0x5b8] sm:$0xff] }
  0xaa   : > { %615 = vmatmul.mubr.f32.gmra.mxu0 %v227_v15  ;;  %935 = vmatmul.mubr.f32.gmra.mxu1 %v355_v16  ;;  %v259_v15 = vld [vmem:[%s2256_s7 + $0x1b0] sm:$0xff] }
  0xab   : > { %619 = vmatprep.mubr.f32.mxu0 %v230_v17  ;;  %939 = vmatprep.mubr.f32.mxu1 %v358_v18  ;;  %v387_v16 = vld [vmem:[%s2256_s7 + $0x5b0] sm:$0xff]  ;;  %v262_v17 = vld [vmem:[%s2256_s7 + $0x1c8] sm:$0xff] }
  0xac   : > { %v390_v18 = vld [vmem:[%s2256_s7 + $0x5c8] sm:$0xff] }
  0xae   : > { %620 = vmatmul.mubr.f32.gmra.mxu0 %v229_v19  ;;  %940 = vmatmul.mubr.f32.gmra.mxu1 %v357_v20  ;;  %v261_v19 = vld [vmem:[%s2256_s7 + $0x1c0] sm:$0xff] }
  0xaf   : > { %624 = vmatprep.mubr.f32.mxu0 %v232_v21  ;;  %944 = vmatprep.mubr.f32.mxu1 %v360_v22  ;;  %v389_v20 = vld [vmem:[%s2256_s7 + $0x5c0] sm:$0xff]  ;;  %v264_v21 = vld [vmem:[%s2256_s7 + $0x1d8] sm:$0xff] }
  0xb0   : > { %v392_v22 = vld [vmem:[%s2256_s7 + $0x5d8] sm:$0xff] }
  0xb2   : > { %625 = vmatmul.mubr.f32.gmra.mxu0 %v231_v23  ;;  %945 = vmatmul.mubr.f32.gmra.mxu1 %v359_v24  ;;  %v263_v23 = vld [vmem:[%s2256_s7 + $0x1d0] sm:$0xff] }
  0xb3   : > { %629 = vmatprep.mubr.f32.mxu0 %v234_v25  ;;  %949 = vmatprep.mubr.f32.mxu1 %v362_v26  ;;  %v391_v24 = vld [vmem:[%s2256_s7 + $0x5d0] sm:$0xff]  ;;  %v266_v25 = vld [vmem:[%s2256_s7 + $0x1e8] sm:$0xff] }
  0xb4   : > { %v394_v26 = vld [vmem:[%s2256_s7 + $0x5e8] sm:$0xff] }
  0xb6   : > { %630 = vmatmul.mubr.f32.gmra.mxu0 %v233_v27  ;;  %950 = vmatmul.mubr.f32.gmra.mxu1 %v361_v28  ;;  %v265_v27 = vld [vmem:[%s2256_s7 + $0x1e0] sm:$0xff] }
  0xb7   : > { %634 = vmatprep.mubr.f32.mxu0 %v236_v29  ;;  %954 = vmatprep.mubr.f32.mxu1 %v364_v30  ;;  %v393_v28 = vld [vmem:[%s2256_s7 + $0x5e0] sm:$0xff]  ;;  %v268_v29 = vld [vmem:[%s2256_s7 + $0x1f8] sm:$0xff] }
  0xb8   : > { %v396_v30 = vld [vmem:[%s2256_s7 + $0x5f8] sm:$0xff] }
  0xba   : > { %635 = vmatmul.mubr.f32.gmra.mxu0 %v235_v31  ;;  %955 = vmatmul.mubr.f32.gmra.mxu1 %v363_v32  ;;  %v267_v31 = vld [vmem:[%s2256_s7 + $0x1f0] sm:$0xff] }
  0xbb   : > { %639 = vmatprep.mubr.f32.mxu0 %v238_v33  ;;  %959 = vmatprep.mubr.f32.mxu1 %v366_v34  ;;  %v395_v32 = vld [vmem:[%s2256_s7 + $0x5f0] sm:$0xff]  ;;  %v270_v33 = vld [vmem:[%s2256_s7 + $0x208] sm:$0xff] }
  0xbc   : > { %v398_v34 = vld [vmem:[%s2256_s7 + $0x608] sm:$0xff] }
  0xbe   : > { %640 = vmatmul.mubr.f32.gmra.mxu0 %v237_v35  ;;  %960 = vmatmul.mubr.f32.gmra.mxu1 %v365_v36  ;;  %v269_v35 = vld [vmem:[%s2256_s7 + $0x200] sm:$0xff] }
  0xbf   : > { %644 = vmatprep.mubr.f32.mxu0 %v240_v37  ;;  %964 = vmatprep.mubr.f32.mxu1 %v368_v38  ;;  %v397_v36 = vld [vmem:[%s2256_s7 + $0x600] sm:$0xff]  ;;  %v272_v37 = vld [vmem:[%s2256_s7 + $0x218] sm:$0xff] }
  0xc0   : > { %v400_v38 = vld [vmem:[%s2256_s7 + $0x618] sm:$0xff] }
  0xc2   : > { %645 = vmatmul.mubr.f32.gmra.mxu0 %v239_v39  ;;  %965 = vmatmul.mubr.f32.gmra.mxu1 %v367_v40  ;;  %v271_v39 = vld [vmem:[%s2256_s7 + $0x210] sm:$0xff] }
  0xc3   : > { %649 = vmatprep.mubr.f32.mxu0 %v242_v41  ;;  %969 = vmatprep.mubr.f32.mxu1 %v370_v42  ;;  %v399_v40 = vld [vmem:[%s2256_s7 + $0x610] sm:$0xff]  ;;  %v274_v41 = vld [vmem:[%s2256_s7 + $0x228] sm:$0xff] }
  0xc4   : > { %v402_v42 = vld [vmem:[%s2256_s7 + $0x628] sm:$0xff] }
  0xc6   : > { %650 = vmatmul.mubr.f32.gmra.mxu0 %v241_v43  ;;  %970 = vmatmul.mubr.f32.gmra.mxu1 %v369_v44  ;;  %v273_v43 = vld [vmem:[%s2256_s7 + $0x220] sm:$0xff] }
  0xc7   : > { %654 = vmatprep.mubr.f32.mxu0 %v244_v45  ;;  %974 = vmatprep.mubr.f32.mxu1 %v372_v46  ;;  %v401_v44 = vld [vmem:[%s2256_s7 + $0x620] sm:$0xff]  ;;  %v276_v45 = vld [vmem:[%s2256_s7 + $0x238] sm:$0xff] }
  0xc8   : > { %v404_v46 = vld [vmem:[%s2256_s7 + $0x638] sm:$0xff] }
  0xca   : > { %655 = vmatmul.mubr.f32.gmra.mxu0 %v243_v47  ;;  %975 = vmatmul.mubr.f32.gmra.mxu1 %v371_v48  ;;  %v275_v47 = vld [vmem:[%s2256_s7 + $0x230] sm:$0xff] }
  0xcb   : > { %659 = vmatprep.mubr.f32.mxu0 %v246_v49  ;;  %979 = vmatprep.mubr.f32.mxu1 %v374_v50  ;;  %v403_v48 = vld [vmem:[%s2256_s7 + $0x630] sm:$0xff]  ;;  %v278_v49 = vld [vmem:[%s2256_s7 + $0x248] sm:$0xff] }
  0xcc   : > { %v406_v50 = vld [vmem:[%s2256_s7 + $0x648] sm:$0xff] }
  0xce   : > { %660 = vmatmul.mubr.f32.gmra.mxu0 %v245_v51  ;;  %980 = vmatmul.mubr.f32.gmra.mxu1 %v373_v52  ;;  %v277_v51 = vld [vmem:[%s2256_s7 + $0x240] sm:$0xff] }
  0xcf   : > { %664 = vmatprep.mubr.f32.mxu0 %v248_v53  ;;  %984 = vmatprep.mubr.f32.mxu1 %v376_v54  ;;  %v405_v52 = vld [vmem:[%s2256_s7 + $0x640] sm:$0xff]  ;;  %v280_v53 = vld [vmem:[%s2256_s7 + $0x258] sm:$0xff] }
  0xd0   : > { %v408_v54 = vld [vmem:[%s2256_s7 + $0x658] sm:$0xff] }
  0xd2   : > { %665 = vmatmul.mubr.f32.gmra.mxu0 %v247_v55  ;;  %985 = vmatmul.mubr.f32.gmra.mxu1 %v375_v56  ;;  %v279_v55 = vld [vmem:[%s2256_s7 + $0x250] sm:$0xff] }
  0xd3   : > { %669 = vmatprep.mubr.f32.mxu0 %v250_v57  ;;  %989 = vmatprep.mubr.f32.mxu1 %v378_v58  ;;  %v407_v56 = vld [vmem:[%s2256_s7 + $0x650] sm:$0xff]  ;;  %v282_v57 = vld [vmem:[%s2256_s7 + $0x268] sm:$0xff] }
  0xd4   : > { %v410_v58 = vld [vmem:[%s2256_s7 + $0x668] sm:$0xff] }
  0xd6   : > { %670 = vmatmul.mubr.f32.gmra.mxu0 %v249_v59  ;;  %990 = vmatmul.mubr.f32.gmra.mxu1 %v377_v60  ;;  %v281_v59 = vld [vmem:[%s2256_s7 + $0x260] sm:$0xff] }
  0xd7   : > { %674 = vmatprep.mubr.f32.mxu0 %v252_v61  ;;  %994 = vmatprep.mubr.f32.mxu1 %v380_v62  ;;  %v409_v60 = vld [vmem:[%s2256_s7 + $0x660] sm:$0xff]  ;;  %v284_v61 = vld [vmem:[%s2256_s7 + $0x278] sm:$0xff] }
  0xd8   : > { %v412_v62 = vld [vmem:[%s2256_s7 + $0x678] sm:$0xff] }
  0xda   : > { %675 = vmatmul.mubr.f32.gmra.mxu0 %v251_v63  ;;  %995 = vmatmul.mubr.f32.gmra.mxu1 %v379_v0  ;;  %v283_v63 = vld [vmem:[%s2256_s7 + $0x270] sm:$0xff] }
  0xdb   : > { %679 = vmatprep.mubr.f32.mxu0 %v254_v1  ;;  %999 = vmatprep.mubr.f32.mxu1 %v382_v2  ;;  %v411_v0 = vld [vmem:[%s2256_s7 + $0x670] sm:$0xff]  ;;  %v286_v1 = vld [vmem:[%s2256_s7 + $0x288] sm:$0xff] }
  0xdc   : > { %v414_v2 = vld [vmem:[%s2256_s7 + $0x688] sm:$0xff] }
  0xde   : > { %680 = vmatmul.mubr.f32.gmra.mxu0 %v253_v3  ;;  %1000 = vmatmul.mubr.f32.gmra.mxu1 %v381_v4  ;;  %v285_v3 = vld [vmem:[%s2256_s7 + $0x280] sm:$0xff] }
  0xdf   : > { %684 = vmatprep.mubr.f32.mxu0 %v256_v5  ;;  %1004 = vmatprep.mubr.f32.mxu1 %v384_v6  ;;  %v413_v4 = vld [vmem:[%s2256_s7 + $0x680] sm:$0xff]  ;;  %v288_v5 = vld [vmem:[%s2256_s7 + $0x298] sm:$0xff] }
  0xe0   : > { %v416_v6 = vld [vmem:[%s2256_s7 + $0x698] sm:$0xff] }
  0xe2   : > { %685 = vmatmul.mubr.f32.gmra.mxu0 %v255_v7  ;;  %1005 = vmatmul.mubr.f32.gmra.mxu1 %v383_v8  ;;  %v287_v7 = vld [vmem:[%s2256_s7 + $0x290] sm:$0xff] }
  0xe3   : > { %689 = vmatprep.mubr.f32.mxu0 %v258_v9  ;;  %1009 = vmatprep.mubr.f32.mxu1 %v386_v10  ;;  %v415_v8 = vld [vmem:[%s2256_s7 + $0x690] sm:$0xff]  ;;  %v290_v9 = vld [vmem:[%s2256_s7 + $0x2a8] sm:$0xff] }
  0xe4   : > { %v418_v10 = vld [vmem:[%s2256_s7 + $0x6a8] sm:$0xff] }
  0xe6   : > { %690 = vmatmul.mubr.f32.gmra.mxu0 %v257_v11  ;;  %1010 = vmatmul.mubr.f32.gmra.mxu1 %v385_v12  ;;  %v289_v11 = vld [vmem:[%s2256_s7 + $0x2a0] sm:$0xff] }
  0xe7   : > { %694 = vmatprep.mubr.f32.mxu0 %v260_v13  ;;  %1014 = vmatprep.mubr.f32.mxu1 %v388_v14  ;;  %v417_v12 = vld [vmem:[%s2256_s7 + $0x6a0] sm:$0xff]  ;;  %v292_v13 = vld [vmem:[%s2256_s7 + $0x2b8] sm:$0xff] }
  0xe8   : > { %v420_v14 = vld [vmem:[%s2256_s7 + $0x6b8] sm:$0xff] }
  0xea   : > { %695 = vmatmul.mubr.f32.gmra.mxu0 %v259_v15  ;;  %1015 = vmatmul.mubr.f32.gmra.mxu1 %v387_v16  ;;  %v291_v15 = vld [vmem:[%s2256_s7 + $0x2b0] sm:$0xff] }
  0xeb   : > { %699 = vmatprep.mubr.f32.mxu0 %v262_v17  ;;  %1019 = vmatprep.mubr.f32.mxu1 %v390_v18  ;;  %v419_v16 = vld [vmem:[%s2256_s7 + $0x6b0] sm:$0xff]  ;;  %v294_v17 = vld [vmem:[%s2256_s7 + $0x2c8] sm:$0xff] }
  0xec   : > { %v422_v18 = vld [vmem:[%s2256_s7 + $0x6c8] sm:$0xff] }
  0xee   : > { %700 = vmatmul.mubr.f32.gmra.mxu0 %v261_v19  ;;  %1020 = vmatmul.mubr.f32.gmra.mxu1 %v389_v20  ;;  %v293_v19 = vld [vmem:[%s2256_s7 + $0x2c0] sm:$0xff] }
  0xef   : > { %704 = vmatprep.mubr.f32.mxu0 %v264_v21  ;;  %1024 = vmatprep.mubr.f32.mxu1 %v392_v22  ;;  %v421_v20 = vld [vmem:[%s2256_s7 + $0x6c0] sm:$0xff]  ;;  %v296_v21 = vld [vmem:[%s2256_s7 + $0x2d8] sm:$0xff] }
  0xf0   : > { %v424_v22 = vld [vmem:[%s2256_s7 + $0x6d8] sm:$0xff] }
  0xf2   : > { %705 = vmatmul.mubr.f32.gmra.mxu0 %v263_v23  ;;  %1025 = vmatmul.mubr.f32.gmra.mxu1 %v391_v24  ;;  %v295_v23 = vld [vmem:[%s2256_s7 + $0x2d0] sm:$0xff] }
  0xf3   : > { %709 = vmatprep.mubr.f32.mxu0 %v266_v25  ;;  %1029 = vmatprep.mubr.f32.mxu1 %v394_v26  ;;  %v423_v24 = vld [vmem:[%s2256_s7 + $0x6d0] sm:$0xff]  ;;  %v298_v25 = vld [vmem:[%s2256_s7 + $0x2e8] sm:$0xff] }
  0xf4   : > { %v426_v26 = vld [vmem:[%s2256_s7 + $0x6e8] sm:$0xff] }
  0xf6   : > { %710 = vmatmul.mubr.f32.gmra.mxu0 %v265_v27  ;;  %1030 = vmatmul.mubr.f32.gmra.mxu1 %v393_v28  ;;  %v297_v27 = vld [vmem:[%s2256_s7 + $0x2e0] sm:$0xff] }
  0xf7   : > { %714 = vmatprep.mubr.f32.mxu0 %v268_v29  ;;  %1034 = vmatprep.mubr.f32.mxu1 %v396_v30  ;;  %v425_v28 = vld [vmem:[%s2256_s7 + $0x6e0] sm:$0xff]  ;;  %v300_v29 = vld [vmem:[%s2256_s7 + $0x2f8] sm:$0xff] }
  0xf8   : > { %v428_v30 = vld [vmem:[%s2256_s7 + $0x6f8] sm:$0xff] }
  0xfa   : > { %715 = vmatmul.mubr.f32.gmra.mxu0 %v267_v31  ;;  %1035 = vmatmul.mubr.f32.gmra.mxu1 %v395_v32  ;;  %v299_v31 = vld [vmem:[%s2256_s7 + $0x2f0] sm:$0xff] }
  0xfb   : > { %719 = vmatprep.mubr.f32.mxu0 %v270_v33  ;;  %1039 = vmatprep.mubr.f32.mxu1 %v398_v34  ;;  %v427_v32 = vld [vmem:[%s2256_s7 + $0x6f0] sm:$0xff]  ;;  %v302_v33 = vld [vmem:[%s2256_s7 + $0x308] sm:$0xff] }
  0xfc   : > { %v430_v34 = vld [vmem:[%s2256_s7 + $0x708] sm:$0xff] }
  0xfe   : > { %720 = vmatmul.mubr.f32.gmra.mxu0 %v269_v35  ;;  %1040 = vmatmul.mubr.f32.gmra.mxu1 %v397_v36  ;;  %v301_v35 = vld [vmem:[%s2256_s7 + $0x300] sm:$0xff] }
  0xff   : > { %724 = vmatprep.mubr.f32.mxu0 %v272_v37  ;;  %1044 = vmatprep.mubr.f32.mxu1 %v400_v38  ;;  %v429_v36 = vld [vmem:[%s2256_s7 + $0x700] sm:$0xff]  ;;  %v2619_v37 = vstv %s493_s22  ;;  %v304_v38 = vld [vmem:[%s2256_s7 + $0x318] sm:$0xff] }
 0x102   : > { %725 = vmatmul.mubr.f32.gmra.mxu0 %v271_v39  ;;  %1045 = vmatmul.mubr.f32.gmra.mxu1 %v399_v40  ;;  %v432_v39 = vld [vmem:[%s2256_s7 + $0x718] sm:$0xff] }
 0x103   : > { %729 = vmatprep.mubr.f32.mxu0 %v274_v41  ;;  %1049 = vmatprep.mubr.f32.mxu1 %v402_v42 }
 0x106   : > { %730 = vmatmul.mubr.f32.gmra.mxu0 %v273_v43  ;;  %1050 = vmatmul.mubr.f32.gmra.mxu1 %v401_v44  ;;  %v303_v44 = vld [vmem:[%s2256_s7 + $0x310] sm:$0xff] }
 0x107   : > { %734 = vmatprep.mubr.f32.mxu0 %v276_v45  ;;  %1054 = vmatprep.mubr.f32.mxu1 %v404_v46  ;;  %v431_v45 = vld [vmem:[%s2256_s7 + $0x710] sm:$0xff] }
 0x10a   : > { %735 = vmatmul.mubr.f32.gmra.mxu0 %v275_v47  ;;  %1055 = vmatmul.mubr.f32.gmra.mxu1 %v403_v48  ;;  %v306_v48 = vld [vmem:[%s2256_s7 + $0x328] sm:$0xff] }
 0x10b   : > { %739 = vmatprep.mubr.f32.mxu0 %v278_v49  ;;  %1059 = vmatprep.mubr.f32.mxu1 %v406_v50  ;;  %v434_v49 = vld [vmem:[%s2256_s7 + $0x728] sm:$0xff] }
 0x10e   : > { %740 = vmatmul.mubr.f32.gmra.mxu0 %v277_v51  ;;  %1060 = vmatmul.mubr.f32.gmra.mxu1 %v405_v52 }
 0x10f   : > { %744 = vmatprep.mubr.f32.mxu0 %v280_v53  ;;  %1064 = vmatprep.mubr.f32.mxu1 %v408_v54  ;;  %v305_v54 = vld [vmem:[%s2256_s7 + $0x320] sm:$0xff] }
 0x112   : > { %745 = vmatmul.mubr.f32.gmra.mxu0 %v279_v55  ;;  %1065 = vmatmul.mubr.f32.gmra.mxu1 %v407_v56  ;;  %v433_v55 = vld [vmem:[%s2256_s7 + $0x720] sm:$0xff] }
 0x113   : > { %749 = vmatprep.mubr.f32.mxu0 %v282_v57  ;;  %1069 = vmatprep.mubr.f32.mxu1 %v410_v58  ;;  %v308_v58 = vld [vmem:[%s2256_s7 + $0x338] sm:$0xff] }
 0x116   : > { %750 = vmatmul.mubr.f32.gmra.mxu0 %v281_v59  ;;  %1070 = vmatmul.mubr.f32.gmra.mxu1 %v409_v60  ;;  %v436_v59 = vld [vmem:[%s2256_s7 + $0x738] sm:$0xff] }
 0x117   : > { %754 = vmatprep.mubr.f32.mxu0 %v284_v61  ;;  %1074 = vmatprep.mubr.f32.mxu1 %v412_v62 }
 0x11a   : > { %755 = vmatmul.mubr.f32.gmra.mxu0 %v283_v63  ;;  %1075 = vmatmul.mubr.f32.gmra.mxu1 %v411_v0  ;;  %v307_v0 = vld [vmem:[%s2256_s7 + $0x330] sm:$0xff] }
 0x11b   : > { %759 = vmatprep.mubr.f32.mxu0 %v286_v1  ;;  %1079 = vmatprep.mubr.f32.mxu1 %v414_v2  ;;  %v435_v1 = vld [vmem:[%s2256_s7 + $0x730] sm:$0xff] }
 0x11e   : > { %760 = vmatmul.mubr.f32.gmra.mxu0 %v285_v3  ;;  %1080 = vmatmul.mubr.f32.gmra.mxu1 %v413_v4  ;;  %v310_v4 = vld [vmem:[%s2256_s7 + $0x348] sm:$0xff] }
 0x11f   : > { %764 = vmatprep.mubr.f32.mxu0 %v288_v5  ;;  %1084 = vmatprep.mubr.f32.mxu1 %v416_v6  ;;  %v438_v5 = vld [vmem:[%s2256_s7 + $0x748] sm:$0xff] }
 0x122   : > { %765 = vmatmul.mubr.f32.gmra.mxu0 %v287_v7  ;;  %1085 = vmatmul.mubr.f32.gmra.mxu1 %v415_v8 }
 0x123   : > { %769 = vmatprep.mubr.f32.mxu0 %v290_v9  ;;  %1089 = vmatprep.mubr.f32.mxu1 %v418_v10  ;;  %v309_v10 = vld [vmem:[%s2256_s7 + $0x340] sm:$0xff] }
 0x126   : > { %770 = vmatmul.mubr.f32.gmra.mxu0 %v289_v11  ;;  %1090 = vmatmul.mubr.f32.gmra.mxu1 %v417_v12  ;;  %v437_v11 = vld [vmem:[%s2256_s7 + $0x740] sm:$0xff] }
 0x127   : > { %774 = vmatprep.mubr.f32.mxu0 %v292_v13  ;;  %1094 = vmatprep.mubr.f32.mxu1 %v420_v14  ;;  %v312_v14 = vld [vmem:[%s2256_s7 + $0x358] sm:$0xff] }
 0x12a   : > { %775 = vmatmul.mubr.f32.gmra.mxu0 %v291_v15  ;;  %1095 = vmatmul.mubr.f32.gmra.mxu1 %v419_v16  ;;  %v440_v15 = vld [vmem:[%s2256_s7 + $0x758] sm:$0xff] }
 0x12b   : > { %779 = vmatprep.mubr.f32.mxu0 %v294_v17  ;;  %1099 = vmatprep.mubr.f32.mxu1 %v422_v18 }
 0x12e   : > { %780 = vmatmul.mubr.f32.gmra.mxu0 %v293_v19  ;;  %1100 = vmatmul.mubr.f32.gmra.mxu1 %v421_v20  ;;  %v311_v20 = vld [vmem:[%s2256_s7 + $0x350] sm:$0xff] }
 0x12f   : > { %784 = vmatprep.mubr.f32.mxu0 %v296_v21  ;;  %1104 = vmatprep.mubr.f32.mxu1 %v424_v22  ;;  %v439_v21 = vld [vmem:[%s2256_s7 + $0x750] sm:$0xff] }
 0x132   : > { %785 = vmatmul.mubr.f32.gmra.mxu0 %v295_v23  ;;  %1105 = vmatmul.mubr.f32.gmra.mxu1 %v423_v24  ;;  %v314_v24 = vld [vmem:[%s2256_s7 + $0x368] sm:$0xff] }
 0x133   : > { %789 = vmatprep.mubr.f32.mxu0 %v298_v25  ;;  %1109 = vmatprep.mubr.f32.mxu1 %v426_v26  ;;  %v442_v25 = vld [vmem:[%s2256_s7 + $0x768] sm:$0xff] }
 0x136   : > { %790 = vmatmul.mubr.f32.gmra.mxu0 %v297_v27  ;;  %1110 = vmatmul.mubr.f32.gmra.mxu1 %v425_v28 }
 0x137   : > { %794 = vmatprep.mubr.f32.mxu0 %v300_v29  ;;  %1114 = vmatprep.mubr.f32.mxu1 %v428_v30  ;;  %v313_v30 = vld [vmem:[%s2256_s7 + $0x360] sm:$0xff] }
 0x13a   : > { %795 = vmatmul.mubr.f32.gmra.mxu0 %v299_v31  ;;  %1115 = vmatmul.mubr.f32.gmra.mxu1 %v427_v32  ;;  %v441_v31 = vld [vmem:[%s2256_s7 + $0x760] sm:$0xff] }
 0x13b   : > { %799 = vmatprep.mubr.f32.mxu0 %v302_v33  ;;  %1119 = vmatprep.mubr.f32.mxu1 %v430_v34  ;;  %v316_v34 = vld [vmem:[%s2256_s7 + $0x378] sm:$0xff] }
 0x13e   : > { %v561_v40 = vpop.f32.mrf.mxu0  ;;  %800 = vmatmul.mubr.f32.gmra.mxu0 %v301_v35  ;;  %v881_v41 = vpop.f32.mrf.mxu1  ;;  %1120 = vmatmul.mubr.f32.gmra.mxu1 %v429_v36  ;;  %v444_v35 = vld [vmem:[%s2256_s7 + $0x778] sm:$0xff] }
 0x13f   : > { %v562_v42 = vadd.f32 %v561_v40, %v2619_v37  ;;  %v882_v43 = vadd.f32 %v881_v41, %v2619_v37  ;;  %804 = vmatprep.mubr.f32.mxu0 %v304_v38  ;;  %1124 = vmatprep.mubr.f32.mxu1 %v432_v39  ;;  %v315_v41 = vld [vmem:[%s2256_s7 + $0x370] sm:$0xff] }
 0x140   : > { %v563_v46 = vpop.f32.mrf.mxu0  ;;  %v883_v47 = vpop.f32.mrf.mxu1 }
 0x141   : > { %1201 = vst.msk [vmem:[%s2629_s4] sm:$0xff] %vm1200_vm0, %v562_v42  ;;  %1265 = vst.msk [vmem:[%s2629_s4 + $0x200] sm:$0xff] %vm1200_vm0, %v882_v43  ;;  %v443_v42 = vld [vmem:[%s2256_s7 + $0x770] sm:$0xff]  ;;  %v446_v46 = vld [vmem:[%s2256_s7 + $0x788] sm:$0xff] }
 0x142   : > { %v566_v50 = vpop.f32.mrf.mxu0  ;;  %805 = vmatmul.mubr.f32.gmra.mxu0 %v303_v44  ;;  %v886_v51 = vpop.f32.mrf.mxu1  ;;  %1125 = vmatmul.mubr.f32.gmra.mxu1 %v431_v45  ;;  %v318_v45 = vld [vmem:[%s2256_s7 + $0x388] sm:$0xff] }
 0x143   : > { %v567_v52 = vadd.f32 %v566_v50, %v2619_v37  ;;  %v887_v53 = vadd.f32 %v886_v51, %v2619_v37  ;;  %809 = vmatprep.mubr.f32.mxu0 %v306_v48  ;;  %1129 = vmatprep.mubr.f32.mxu1 %v434_v49  ;;  %v317_v51 = vld [vmem:[%s2256_s7 + $0x380] sm:$0xff] }
 0x144   : > { %v568_v56 = vpop.f32.mrf.mxu0  ;;  %v888_v57 = vpop.f32.mrf.mxu1 }
 0x145   : > { %1202 = vst.msk [vmem:[%s2629_s4 + $0x8] sm:$0xff] %vm1200_vm0, %v567_v52  ;;  %1266 = vst.msk [vmem:[%s2629_s4 + $0x208] sm:$0xff] %vm1200_vm0, %v887_v53  ;;  %v445_v52 = vld [vmem:[%s2256_s7 + $0x780] sm:$0xff]  ;;  %v448_v56 = vld [vmem:[%s2256_s7 + $0x798] sm:$0xff] }
 0x146   : > { %v571_v60 = vpop.f32.mrf.mxu0  ;;  %810 = vmatmul.mubr.f32.gmra.mxu0 %v305_v54  ;;  %v891_v61 = vpop.f32.mrf.mxu1  ;;  %1130 = vmatmul.mubr.f32.gmra.mxu1 %v433_v55  ;;  %v320_v55 = vld [vmem:[%s2256_s7 + $0x398] sm:$0xff] }
 0x147   : > { %v572_v62 = vadd.f32 %v571_v60, %v2619_v37  ;;  %v892_v63 = vadd.f32 %v891_v61, %v2619_v37  ;;  %814 = vmatprep.mubr.f32.mxu0 %v308_v58  ;;  %1134 = vmatprep.mubr.f32.mxu1 %v436_v59  ;;  %v319_v61 = vld [vmem:[%s2256_s7 + $0x390] sm:$0xff] }
 0x148   : > { %v573_v2 = vpop.f32.mrf.mxu0  ;;  %v893_v3 = vpop.f32.mrf.mxu1 }
 0x149   : > { %1203 = vst.msk [vmem:[%s2629_s4 + $0x10] sm:$0xff] %vm1200_vm0, %v572_v62  ;;  %1267 = vst.msk [vmem:[%s2629_s4 + $0x210] sm:$0xff] %vm1200_vm0, %v892_v63  ;;  %v447_v62 = vld [vmem:[%s2256_s7 + $0x790] sm:$0xff]  ;;  %v450_v2 = vld [vmem:[%s2256_s7 + $0x7a8] sm:$0xff] }
 0x14a   : > { %v576_v6 = vpop.f32.mrf.mxu0  ;;  %815 = vmatmul.mubr.f32.gmra.mxu0 %v307_v0  ;;  %v896_v7 = vpop.f32.mrf.mxu1  ;;  %1135 = vmatmul.mubr.f32.gmra.mxu1 %v435_v1  ;;  %v322_v1 = vld [vmem:[%s2256_s7 + $0x3a8] sm:$0xff] }
 0x14b   : > { %v577_v8 = vadd.f32 %v576_v6, %v2619_v37  ;;  %v897_v9 = vadd.f32 %v896_v7, %v2619_v37  ;;  %819 = vmatprep.mubr.f32.mxu0 %v310_v4  ;;  %1139 = vmatprep.mubr.f32.mxu1 %v438_v5  ;;  %v321_v7 = vld [vmem:[%s2256_s7 + $0x3a0] sm:$0xff] }
 0x14c   : > { %v578_v12 = vpop.f32.mrf.mxu0  ;;  %v898_v13 = vpop.f32.mrf.mxu1 }
 0x14d   : > { %1204 = vst.msk [vmem:[%s2629_s4 + $0x18] sm:$0xff] %vm1200_vm0, %v577_v8  ;;  %1268 = vst.msk [vmem:[%s2629_s4 + $0x218] sm:$0xff] %vm1200_vm0, %v897_v9  ;;  %v449_v8 = vld [vmem:[%s2256_s7 + $0x7a0] sm:$0xff]  ;;  %v452_v12 = vld [vmem:[%s2256_s7 + $0x7b8] sm:$0xff] }
 0x14e   : > { %v581_v16 = vpop.f32.mrf.mxu0  ;;  %820 = vmatmul.mubr.f32.gmra.mxu0 %v309_v10  ;;  %v901_v17 = vpop.f32.mrf.mxu1  ;;  %1140 = vmatmul.mubr.f32.gmra.mxu1 %v437_v11  ;;  %v324_v11 = vld [vmem:[%s2256_s7 + $0x3b8] sm:$0xff] }
 0x14f   : > { %v582_v18 = vadd.f32 %v581_v16, %v2619_v37  ;;  %v902_v19 = vadd.f32 %v901_v17, %v2619_v37  ;;  %824 = vmatprep.mubr.f32.mxu0 %v312_v14  ;;  %1144 = vmatprep.mubr.f32.mxu1 %v440_v15  ;;  %v323_v17 = vld [vmem:[%s2256_s7 + $0x3b0] sm:$0xff] }
 0x150   : > { %v583_v22 = vpop.f32.mrf.mxu0  ;;  %v903_v23 = vpop.f32.mrf.mxu1 }
 0x151   : > { %1205 = vst.msk [vmem:[%s2629_s4 + $0x20] sm:$0xff] %vm1200_vm0, %v582_v18  ;;  %1269 = vst.msk [vmem:[%s2629_s4 + $0x220] sm:$0xff] %vm1200_vm0, %v902_v19  ;;  %v451_v18 = vld [vmem:[%s2256_s7 + $0x7b0] sm:$0xff]  ;;  %v454_v22 = vld [vmem:[%s2256_s7 + $0x7c8] sm:$0xff] }
 0x152   : > { %v586_v26 = vpop.f32.mrf.mxu0  ;;  %825 = vmatmul.mubr.f32.gmra.mxu0 %v311_v20  ;;  %v906_v27 = vpop.f32.mrf.mxu1  ;;  %1145 = vmatmul.mubr.f32.gmra.mxu1 %v439_v21  ;;  %v326_v21 = vld [vmem:[%s2256_s7 + $0x3c8] sm:$0xff] }
 0x153   : > { %v587_v28 = vadd.f32 %v586_v26, %v2619_v37  ;;  %v907_v29 = vadd.f32 %v906_v27, %v2619_v37  ;;  %829 = vmatprep.mubr.f32.mxu0 %v314_v24  ;;  %1149 = vmatprep.mubr.f32.mxu1 %v442_v25  ;;  %v325_v27 = vld [vmem:[%s2256_s7 + $0x3c0] sm:$0xff] }
 0x154   : > { %v588_v32 = vpop.f32.mrf.mxu0  ;;  %v908_v33 = vpop.f32.mrf.mxu1 }
 0x155   : > { %1206 = vst.msk [vmem:[%s2629_s4 + $0x28] sm:$0xff] %vm1200_vm0, %v587_v28  ;;  %1270 = vst.msk [vmem:[%s2629_s4 + $0x228] sm:$0xff] %vm1200_vm0, %v907_v29  ;;  %v453_v28 = vld [vmem:[%s2256_s7 + $0x7c0] sm:$0xff]  ;;  %v456_v32 = vld [vmem:[%s2256_s7 + $0x7d8] sm:$0xff] }
 0x156   : > { %v591_v36 = vpop.f32.mrf.mxu0  ;;  %830 = vmatmul.mubr.f32.gmra.mxu0 %v313_v30  ;;  %v911_v38 = vpop.f32.mrf.mxu1  ;;  %1150 = vmatmul.mubr.f32.gmra.mxu1 %v441_v31  ;;  %v328_v31 = vld [vmem:[%s2256_s7 + $0x3d8] sm:$0xff] }
 0x157   : > { %v592_v39 = vadd.f32 %v591_v36, %v2619_v37  ;;  %v912_v40 = vadd.f32 %v911_v38, %v2619_v37  ;;  %834 = vmatprep.mubr.f32.mxu0 %v316_v34  ;;  %1154 = vmatprep.mubr.f32.mxu1 %v444_v35  ;;  %v327_v38 = vld [vmem:[%s2256_s7 + $0x3d0] sm:$0xff] }
 0x158   : > { %v593_v43 = vpop.f32.mrf.mxu0  ;;  %v913_v44 = vpop.f32.mrf.mxu1 }
 0x159   : > { %1207 = vst.msk [vmem:[%s2629_s4 + $0x30] sm:$0xff] %vm1200_vm0, %v592_v39  ;;  %1271 = vst.msk [vmem:[%s2629_s4 + $0x230] sm:$0xff] %vm1200_vm0, %v912_v40  ;;  %v455_v39 = vld [vmem:[%s2256_s7 + $0x7d0] sm:$0xff]  ;;  %v458_v43 = vld [vmem:[%s2256_s7 + $0x7e8] sm:$0xff] }
 0x15a   : > { %v596_v47 = vpop.f32.mrf.mxu0  ;;  %835 = vmatmul.mubr.f32.gmra.mxu0 %v315_v41  ;;  %v916_v48 = vpop.f32.mrf.mxu1  ;;  %1155 = vmatmul.mubr.f32.gmra.mxu1 %v443_v42  ;;  %v330_v42 = vld [vmem:[%s2256_s7 + $0x3e8] sm:$0xff] }
 0x15b   : > { %v597_v49 = vadd.f32 %v596_v47, %v2619_v37  ;;  %v917_v50 = vadd.f32 %v916_v48, %v2619_v37  ;;  %839 = vmatprep.mubr.f32.mxu0 %v318_v45  ;;  %1159 = vmatprep.mubr.f32.mxu1 %v446_v46  ;;  %v329_v48 = vld [vmem:[%s2256_s7 + $0x3e0] sm:$0xff] }
 0x15c   : > { %v598_v53 = vpop.f32.mrf.mxu0  ;;  %v918_v54 = vpop.f32.mrf.mxu1 }
 0x15d   : > { %1208 = vst.msk [vmem:[%s2629_s4 + $0x38] sm:$0xff] %vm1200_vm0, %v597_v49  ;;  %1272 = vst.msk [vmem:[%s2629_s4 + $0x238] sm:$0xff] %vm1200_vm0, %v917_v50  ;;  %v457_v49 = vld [vmem:[%s2256_s7 + $0x7e0] sm:$0xff]  ;;  %v460_v53 = vld [vmem:[%s2256_s7 + $0x7f8] sm:$0xff] }
 0x15e   : > { %v601_v57 = vpop.f32.mrf.mxu0  ;;  %840 = vmatmul.mubr.f32.gmra.mxu0 %v317_v51  ;;  %v921_v58 = vpop.f32.mrf.mxu1  ;;  %1160 = vmatmul.mubr.f32.gmra.mxu1 %v445_v52  ;;  %v332_v52 = vld [vmem:[%s2256_s7 + $0x3f8] sm:$0xff] }
 0x15f   : > { %v602_v59 = vadd.f32 %v601_v57, %v2619_v37  ;;  %v922_v60 = vadd.f32 %v921_v58, %v2619_v37  ;;  %844 = vmatprep.mubr.f32.mxu0 %v320_v55  ;;  %1164 = vmatprep.mubr.f32.mxu1 %v448_v56  ;;  %v331_v58 = vld [vmem:[%s2256_s7 + $0x3f0] sm:$0xff] }
 0x160   : > { %v603_v63 = vpop.f32.mrf.mxu0  ;;  %v923_v0 = vpop.f32.mrf.mxu1 }
 0x161   : > { %1209 = vst.msk [vmem:[%s2629_s4 + $0x40] sm:$0xff] %vm1200_vm0, %v602_v59  ;;  %1273 = vst.msk [vmem:[%s2629_s4 + $0x240] sm:$0xff] %vm1200_vm0, %v922_v60  ;;  %v459_v59 = vld [vmem:[%s2256_s7 + $0x7f0] sm:$0xff]  ;;  %s1824_s7 = sshll.u32 (%p2203_p8), %s2182_s2, 7 }
 0x162   : > { %v606_v3 = vpop.f32.mrf.mxu0  ;;  %845 = vmatmul.mubr.f32.gmra.mxu0 %v319_v61  ;;  %v926_v4 = vpop.f32.mrf.mxu1  ;;  %1165 = vmatmul.mubr.f32.gmra.mxu1 %v447_v62  ;;  %s1337_s11 = ssub.s32 (%p2203_p8), 707, %s1824_s7 }
 0x163   : > { %v607_v5 = vadd.f32 %v606_v3, %v2619_v37  ;;  %v927_v6 = vadd.f32 %v926_v4, %v2619_v37  ;;  %849 = vmatprep.mubr.f32.mxu0 %v322_v1  ;;  %1169 = vmatprep.mubr.f32.mxu1 %v450_v2  ;;  %p1338_p7 = scmp.lt.s32.totalorder (%p2203_p8), %s1337_s11, 128 }
 0x164   : > { %v608_v9 = vpop.f32.mrf.mxu0  ;;  %v928_v10 = vpop.f32.mrf.mxu1 }
 0x165   : > { %1210 = vst.msk [vmem:[%s2629_s4 + $0x48] sm:$0xff] %vm1200_vm0, %v607_v5  ;;  %1274 = vst.msk [vmem:[%s2629_s4 + $0x248] sm:$0xff] %vm1200_vm0, %v927_v6 }
 0x166   : > { %v611_v13 = vpop.f32.mrf.mxu0  ;;  %850 = vmatmul.mubr.f32.gmra.mxu0 %v321_v7  ;;  %v931_v14 = vpop.f32.mrf.mxu1  ;;  %1170 = vmatmul.mubr.f32.gmra.mxu1 %v449_v8 }
 0x167   : > { %v612_v15 = vadd.f32 %v611_v13, %v2619_v37  ;;  %v932_v16 = vadd.f32 %v931_v14, %v2619_v37  ;;  %854 = vmatprep.mubr.f32.mxu0 %v324_v11  ;;  %1174 = vmatprep.mubr.f32.mxu1 %v452_v12 }
 0x168   : > { %v613_v19 = vpop.f32.mrf.mxu0  ;;  %v933_v20 = vpop.f32.mrf.mxu1 }
 0x169   : > { %1211 = vst.msk [vmem:[%s2629_s4 + $0x50] sm:$0xff] %vm1200_vm0, %v612_v15  ;;  %1275 = vst.msk [vmem:[%s2629_s4 + $0x250] sm:$0xff] %vm1200_vm0, %v932_v16 }
 0x16a   : > { %v616_v23 = vpop.f32.mrf.mxu0  ;;  %855 = vmatmul.mubr.f32.gmra.mxu0 %v323_v17  ;;  %v936_v24 = vpop.f32.mrf.mxu1  ;;  %1175 = vmatmul.mubr.f32.gmra.mxu1 %v451_v18 }
 0x16b   : > { %v617_v25 = vadd.f32 %v616_v23, %v2619_v37  ;;  %v937_v26 = vadd.f32 %v936_v24, %v2619_v37  ;;  %859 = vmatprep.mubr.f32.mxu0 %v326_v21  ;;  %1179 = vmatprep.mubr.f32.mxu1 %v454_v22 }
 0x16c   : > { %v618_v29 = vpop.f32.mrf.mxu0  ;;  %v938_v30 = vpop.f32.mrf.mxu1 }
 0x16d   : > { %1212 = vst.msk [vmem:[%s2629_s4 + $0x58] sm:$0xff] %vm1200_vm0, %v617_v25  ;;  %1276 = vst.msk [vmem:[%s2629_s4 + $0x258] sm:$0xff] %vm1200_vm0, %v937_v26 }
 0x16e   : > { %v621_v33 = vpop.f32.mrf.mxu0  ;;  %860 = vmatmul.mubr.f32.gmra.mxu0 %v325_v27  ;;  %v941_v34 = vpop.f32.mrf.mxu1  ;;  %1180 = vmatmul.mubr.f32.gmra.mxu1 %v453_v28 }
 0x16f   : > { %v622_v35 = vadd.f32 %v621_v33, %v2619_v37  ;;  %v942_v36 = vadd.f32 %v941_v34, %v2619_v37  ;;  %864 = vmatprep.mubr.f32.mxu0 %v328_v31  ;;  %1184 = vmatprep.mubr.f32.mxu1 %v456_v32 }
 0x170   : > { %v623_v40 = vpop.f32.mrf.mxu0  ;;  %v943_v41 = vpop.f32.mrf.mxu1 }
 0x171   : > { %1213 = vst.msk [vmem:[%s2629_s4 + $0x60] sm:$0xff] %vm1200_vm0, %v622_v35  ;;  %1277 = vst.msk [vmem:[%s2629_s4 + $0x260] sm:$0xff] %vm1200_vm0, %v942_v36 }
 0x172   : > { %v626_v44 = vpop.f32.mrf.mxu0  ;;  %865 = vmatmul.mubr.f32.gmra.mxu0 %v327_v38  ;;  %v946_v45 = vpop.f32.mrf.mxu1  ;;  %1185 = vmatmul.mubr.f32.gmra.mxu1 %v455_v39 }
 0x173   : > { %v627_v46 = vadd.f32 %v626_v44, %v2619_v37  ;;  %v947_v47 = vadd.f32 %v946_v45, %v2619_v37  ;;  %869 = vmatprep.mubr.f32.mxu0 %v330_v42  ;;  %1189 = vmatprep.mubr.f32.mxu1 %v458_v43 }
 0x174   : > { %v628_v50 = vpop.f32.mrf.mxu0  ;;  %v948_v51 = vpop.f32.mrf.mxu1 }
 0x175   : > { %1214 = vst.msk [vmem:[%s2629_s4 + $0x68] sm:$0xff] %vm1200_vm0, %v627_v46  ;;  %1278 = vst.msk [vmem:[%s2629_s4 + $0x268] sm:$0xff] %vm1200_vm0, %v947_v47 }
 0x176   : > { %v631_v54 = vpop.f32.mrf.mxu0  ;;  %870 = vmatmul.mubr.f32.gmra.mxu0 %v329_v48  ;;  %v951_v55 = vpop.f32.mrf.mxu1  ;;  %1190 = vmatmul.mubr.f32.gmra.mxu1 %v457_v49 }
 0x177   : > { %v632_v56 = vadd.f32 %v631_v54, %v2619_v37  ;;  %v952_v57 = vadd.f32 %v951_v55, %v2619_v37  ;;  %874 = vmatprep.mubr.f32.mxu0 %v332_v52  ;;  %1194 = vmatprep.mubr.f32.mxu1 %v460_v53 }
 0x178   : > { %v633_v60 = vpop.f32.mrf.mxu0  ;;  %v953_v61 = vpop.f32.mrf.mxu1 }
 0x179   : > { %1215 = vst.msk [vmem:[%s2629_s4 + $0x70] sm:$0xff] %vm1200_vm0, %v632_v56  ;;  %1279 = vst.msk [vmem:[%s2629_s4 + $0x270] sm:$0xff] %vm1200_vm0, %v952_v57 }
 0x17a   : > { %v636_v62 = vpop.f32.mrf.mxu0  ;;  %875 = vmatmul.mubr.f32.gmra.mxu0 %v331_v58  ;;  %v956_v63 = vpop.f32.mrf.mxu1  ;;  %1195 = vmatmul.mubr.f32.gmra.mxu1 %v459_v59 }
 0x17b   : > { %v637_v0 = vadd.f32 %v636_v62, %v2619_v37  ;;  %v957_v1 = vadd.f32 %v956_v63, %v2619_v37 }
 0x17c   : > { %v638_v2 = vpop.f32.mrf.mxu0  ;;  %v958_v3 = vpop.f32.mrf.mxu1 }
 0x17d   : > { %1216 = vst.msk [vmem:[%s2629_s4 + $0x78] sm:$0xff] %vm1200_vm0, %v637_v0  ;;  %1280 = vst.msk [vmem:[%s2629_s4 + $0x278] sm:$0xff] %vm1200_vm0, %v957_v1 }
 0x17e   : > { %v641_v4 = vpop.f32.mrf.mxu0  ;;  %v961_v5 = vpop.f32.mrf.mxu1 }
 0x17f   : > { %v642_v6 = vadd.f32 %v641_v4, %v2619_v37  ;;  %v962_v7 = vadd.f32 %v961_v5, %v2619_v37 }
 0x180   : > { %v643_v8 = vpop.f32.mrf.mxu0  ;;  %v963_v9 = vpop.f32.mrf.mxu1 }
 0x181   : > { %1217 = vst.msk [vmem:[%s2629_s4 + $0x80] sm:$0xff] %vm1200_vm0, %v642_v6  ;;  %1281 = vst.msk [vmem:[%s2629_s4 + $0x280] sm:$0xff] %vm1200_vm0, %v962_v7 }
 0x182   : > { %v646_v10 = vpop.f32.mrf.mxu0  ;;  %v966_v11 = vpop.f32.mrf.mxu1 }
 0x183   : > { %v647_v12 = vadd.f32 %v646_v10, %v2619_v37  ;;  %v967_v13 = vadd.f32 %v966_v11, %v2619_v37 }
 0x184   : > { %v648_v14 = vpop.f32.mrf.mxu0  ;;  %v968_v15 = vpop.f32.mrf.mxu1 }
 0x185   : > { %1218 = vst.msk [vmem:[%s2629_s4 + $0x88] sm:$0xff] %vm1200_vm0, %v647_v12  ;;  %1282 = vst.msk [vmem:[%s2629_s4 + $0x288] sm:$0xff] %vm1200_vm0, %v967_v13 }
 0x186   : > { %v651_v16 = vpop.f32.mrf.mxu0  ;;  %v971_v17 = vpop.f32.mrf.mxu1 }
 0x187   : > { %v652_v18 = vadd.f32 %v651_v16, %v2619_v37  ;;  %v972_v19 = vadd.f32 %v971_v17, %v2619_v37 }
 0x188   : > { %v653_v20 = vpop.f32.mrf.mxu0  ;;  %v973_v21 = vpop.f32.mrf.mxu1 }
 0x189   : > { %1219 = vst.msk [vmem:[%s2629_s4 + $0x90] sm:$0xff] %vm1200_vm0, %v652_v18  ;;  %1283 = vst.msk [vmem:[%s2629_s4 + $0x290] sm:$0xff] %vm1200_vm0, %v972_v19 }
 0x18a   : > { %v656_v22 = vpop.f32.mrf.mxu0  ;;  %v976_v23 = vpop.f32.mrf.mxu1 }
 0x18b   : > { %v657_v24 = vadd.f32 %v656_v22, %v2619_v37  ;;  %v977_v25 = vadd.f32 %v976_v23, %v2619_v37 }
 0x18c   : > { %v658_v26 = vpop.f32.mrf.mxu0  ;;  %v978_v27 = vpop.f32.mrf.mxu1 }
 0x18d   : > { %1220 = vst.msk [vmem:[%s2629_s4 + $0x98] sm:$0xff] %vm1200_vm0, %v657_v24  ;;  %1284 = vst.msk [vmem:[%s2629_s4 + $0x298] sm:$0xff] %vm1200_vm0, %v977_v25 }
 0x18e   : > { %v661_v28 = vpop.f32.mrf.mxu0  ;;  %v981_v29 = vpop.f32.mrf.mxu1 }
 0x18f   : > { %v662_v30 = vadd.f32 %v661_v28, %v2619_v37  ;;  %v982_v31 = vadd.f32 %v981_v29, %v2619_v37 }
 0x190   : > { %v663_v32 = vpop.f32.mrf.mxu0  ;;  %v983_v33 = vpop.f32.mrf.mxu1 }
 0x191   : > { %1221 = vst.msk [vmem:[%s2629_s4 + $0xa0] sm:$0xff] %vm1200_vm0, %v662_v30  ;;  %1285 = vst.msk [vmem:[%s2629_s4 + $0x2a0] sm:$0xff] %vm1200_vm0, %v982_v31 }
 0x192   : > { %v666_v34 = vpop.f32.mrf.mxu0  ;;  %v986_v35 = vpop.f32.mrf.mxu1 }
 0x193   : > { %v667_v36 = vadd.f32 %v666_v34, %v2619_v37  ;;  %v987_v38 = vadd.f32 %v986_v35, %v2619_v37 }
 0x194   : > { %v668_v39 = vpop.f32.mrf.mxu0  ;;  %v988_v40 = vpop.f32.mrf.mxu1 }
 0x195   : > { %1222 = vst.msk [vmem:[%s2629_s4 + $0xa8] sm:$0xff] %vm1200_vm0, %v667_v36  ;;  %1286 = vst.msk [vmem:[%s2629_s4 + $0x2a8] sm:$0xff] %vm1200_vm0, %v987_v38 }
 0x196   : > { %v671_v41 = vpop.f32.mrf.mxu0  ;;  %v991_v42 = vpop.f32.mrf.mxu1 }
 0x197   : > { %v672_v43 = vadd.f32 %v671_v41, %v2619_v37  ;;  %v992_v44 = vadd.f32 %v991_v42, %v2619_v37 }
 0x198   : > { %v673_v45 = vpop.f32.mrf.mxu0  ;;  %v993_v46 = vpop.f32.mrf.mxu1 }
 0x199   : > { %1223 = vst.msk [vmem:[%s2629_s4 + $0xb0] sm:$0xff] %vm1200_vm0, %v672_v43  ;;  %1287 = vst.msk [vmem:[%s2629_s4 + $0x2b0] sm:$0xff] %vm1200_vm0, %v992_v44 }
 0x19a   : > { %v676_v47 = vpop.f32.mrf.mxu0  ;;  %v996_v48 = vpop.f32.mrf.mxu1 }
 0x19b   : > { %v677_v49 = vadd.f32 %v676_v47, %v2619_v37  ;;  %v997_v50 = vadd.f32 %v996_v48, %v2619_v37 }
 0x19c   : > { %v678_v51 = vpop.f32.mrf.mxu0  ;;  %v998_v52 = vpop.f32.mrf.mxu1 }
 0x19d   : > { %1224 = vst.msk [vmem:[%s2629_s4 + $0xb8] sm:$0xff] %vm1200_vm0, %v677_v49  ;;  %1288 = vst.msk [vmem:[%s2629_s4 + $0x2b8] sm:$0xff] %vm1200_vm0, %v997_v50 }
 0x19e   : > { %v681_v53 = vpop.f32.mrf.mxu0  ;;  %v1001_v54 = vpop.f32.mrf.mxu1 }
 0x19f   : > { %v682_v55 = vadd.f32 %v681_v53, %v2619_v37  ;;  %v1002_v56 = vadd.f32 %v1001_v54, %v2619_v37 }
 0x1a0   : > { %v683_v57 = vpop.f32.mrf.mxu0  ;;  %v1003_v58 = vpop.f32.mrf.mxu1 }
 0x1a1   : > { %1225 = vst.msk [vmem:[%s2629_s4 + $0xc0] sm:$0xff] %vm1200_vm0, %v682_v55  ;;  %1289 = vst.msk [vmem:[%s2629_s4 + $0x2c0] sm:$0xff] %vm1200_vm0, %v1002_v56 }
 0x1a2   : > { %v686_v59 = vpop.f32.mrf.mxu0  ;;  %v1006_v60 = vpop.f32.mrf.mxu1 }
 0x1a3   : > { %v687_v61 = vadd.f32 %v686_v59, %v2619_v37  ;;  %v1007_v62 = vadd.f32 %v1006_v60, %v2619_v37 }
 0x1a4   : > { %v688_v63 = vpop.f32.mrf.mxu0  ;;  %v1008_v0 = vpop.f32.mrf.mxu1 }
 0x1a5   : > { %1226 = vst.msk [vmem:[%s2629_s4 + $0xc8] sm:$0xff] %vm1200_vm0, %v687_v61  ;;  %1290 = vst.msk [vmem:[%s2629_s4 + $0x2c8] sm:$0xff] %vm1200_vm0, %v1007_v62 }
 0x1a6   : > { %v691_v1 = vpop.f32.mrf.mxu0  ;;  %v1011_v2 = vpop.f32.mrf.mxu1 }
 0x1a7   : > { %v692_v3 = vadd.f32 %v691_v1, %v2619_v37  ;;  %v1012_v4 = vadd.f32 %v1011_v2, %v2619_v37 }
 0x1a8   : > { %v693_v5 = vpop.f32.mrf.mxu0  ;;  %v1013_v6 = vpop.f32.mrf.mxu1 }
 0x1a9   : > { %1227 = vst.msk [vmem:[%s2629_s4 + $0xd0] sm:$0xff] %vm1200_vm0, %v692_v3  ;;  %1291 = vst.msk [vmem:[%s2629_s4 + $0x2d0] sm:$0xff] %vm1200_vm0, %v1012_v4 }
 0x1aa   : > { %v696_v7 = vpop.f32.mrf.mxu0  ;;  %v1016_v8 = vpop.f32.mrf.mxu1 }
 0x1ab   : > { %v697_v9 = vadd.f32 %v696_v7, %v2619_v37  ;;  %v1017_v10 = vadd.f32 %v1016_v8, %v2619_v37 }
 0x1ac   : > { %v698_v11 = vpop.f32.mrf.mxu0  ;;  %v1018_v12 = vpop.f32.mrf.mxu1 }
 0x1ad   : > { %1228 = vst.msk [vmem:[%s2629_s4 + $0xd8] sm:$0xff] %vm1200_vm0, %v697_v9  ;;  %1292 = vst.msk [vmem:[%s2629_s4 + $0x2d8] sm:$0xff] %vm1200_vm0, %v1017_v10 }
 0x1ae   : > { %v701_v13 = vpop.f32.mrf.mxu0  ;;  %v1021_v14 = vpop.f32.mrf.mxu1 }
 0x1af   : > { %v702_v15 = vadd.f32 %v701_v13, %v2619_v37  ;;  %v1022_v16 = vadd.f32 %v1021_v14, %v2619_v37 }
 0x1b0   : > { %v703_v17 = vpop.f32.mrf.mxu0  ;;  %v1023_v18 = vpop.f32.mrf.mxu1 }
 0x1b1   : > { %1229 = vst.msk [vmem:[%s2629_s4 + $0xe0] sm:$0xff] %vm1200_vm0, %v702_v15  ;;  %1293 = vst.msk [vmem:[%s2629_s4 + $0x2e0] sm:$0xff] %vm1200_vm0, %v1022_v16 }
 0x1b2   : > { %v706_v19 = vpop.f32.mrf.mxu0  ;;  %v1026_v20 = vpop.f32.mrf.mxu1 }
 0x1b3   : > { %v707_v21 = vadd.f32 %v706_v19, %v2619_v37  ;;  %v1027_v22 = vadd.f32 %v1026_v20, %v2619_v37 }
 0x1b4   : > { %v708_v23 = vpop.f32.mrf.mxu0  ;;  %v1028_v24 = vpop.f32.mrf.mxu1 }
 0x1b5   : > { %1230 = vst.msk [vmem:[%s2629_s4 + $0xe8] sm:$0xff] %vm1200_vm0, %v707_v21  ;;  %1294 = vst.msk [vmem:[%s2629_s4 + $0x2e8] sm:$0xff] %vm1200_vm0, %v1027_v22 }
 0x1b6   : > { %v711_v25 = vpop.f32.mrf.mxu0  ;;  %v1031_v26 = vpop.f32.mrf.mxu1 }
 0x1b7   : > { %v712_v27 = vadd.f32 %v711_v25, %v2619_v37  ;;  %v1032_v28 = vadd.f32 %v1031_v26, %v2619_v37 }
 0x1b8   : > { %v713_v29 = vpop.f32.mrf.mxu0  ;;  %v1033_v30 = vpop.f32.mrf.mxu1 }
 0x1b9   : > { %1231 = vst.msk [vmem:[%s2629_s4 + $0xf0] sm:$0xff] %vm1200_vm0, %v712_v27  ;;  %1295 = vst.msk [vmem:[%s2629_s4 + $0x2f0] sm:$0xff] %vm1200_vm0, %v1032_v28 }
 0x1ba   : > { %v716_v31 = vpop.f32.mrf.mxu0  ;;  %v1036_v32 = vpop.f32.mrf.mxu1 }
 0x1bb   : > { %v717_v33 = vadd.f32 %v716_v31, %v2619_v37  ;;  %v1037_v34 = vadd.f32 %v1036_v32, %v2619_v37 }
 0x1bc   : > { %v718_v35 = vpop.f32.mrf.mxu0  ;;  %v1038_v36 = vpop.f32.mrf.mxu1 }
 0x1bd   : > { %1232 = vst.msk [vmem:[%s2629_s4 + $0xf8] sm:$0xff] %vm1200_vm0, %v717_v33  ;;  %1296 = vst.msk [vmem:[%s2629_s4 + $0x2f8] sm:$0xff] %vm1200_vm0, %v1037_v34 }
 0x1be   : > { %v721_v38 = vpop.f32.mrf.mxu0  ;;  %v1041_v39 = vpop.f32.mrf.mxu1 }
 0x1bf   : > { %v722_v40 = vadd.f32 %v721_v38, %v2619_v37  ;;  %v1042_v41 = vadd.f32 %v1041_v39, %v2619_v37 }
 0x1c0   : > { %v723_v42 = vpop.f32.mrf.mxu0  ;;  %v1043_v43 = vpop.f32.mrf.mxu1 }
 0x1c1   : > { %1233 = vst.msk [vmem:[%s2629_s4 + $0x100] sm:$0xff] %vm1200_vm0, %v722_v40  ;;  %1297 = vst.msk [vmem:[%s2629_s4 + $0x300] sm:$0xff] %vm1200_vm0, %v1042_v41 }
 0x1c2   : > { %v726_v44 = vpop.f32.mrf.mxu0  ;;  %v1046_v45 = vpop.f32.mrf.mxu1 }
 0x1c3   : > { %v727_v46 = vadd.f32 %v726_v44, %v2619_v37  ;;  %v1047_v47 = vadd.f32 %v1046_v45, %v2619_v37 }
 0x1c4   : > { %v728_v48 = vpop.f32.mrf.mxu0  ;;  %v1048_v49 = vpop.f32.mrf.mxu1 }
 0x1c5   : > { %1234 = vst.msk [vmem:[%s2629_s4 + $0x108] sm:$0xff] %vm1200_vm0, %v727_v46  ;;  %1298 = vst.msk [vmem:[%s2629_s4 + $0x308] sm:$0xff] %vm1200_vm0, %v1047_v47 }
 0x1c6   : > { %v731_v50 = vpop.f32.mrf.mxu0  ;;  %v1051_v51 = vpop.f32.mrf.mxu1 }
 0x1c7   : > { %v732_v52 = vadd.f32 %v731_v50, %v2619_v37  ;;  %v1052_v53 = vadd.f32 %v1051_v51, %v2619_v37 }
 0x1c8   : > { %v733_v54 = vpop.f32.mrf.mxu0  ;;  %v1053_v55 = vpop.f32.mrf.mxu1 }
 0x1c9   : > { %1235 = vst.msk [vmem:[%s2629_s4 + $0x110] sm:$0xff] %vm1200_vm0, %v732_v52  ;;  %1299 = vst.msk [vmem:[%s2629_s4 + $0x310] sm:$0xff] %vm1200_vm0, %v1052_v53 }
 0x1ca   : > { %v736_v56 = vpop.f32.mrf.mxu0  ;;  %v1056_v57 = vpop.f32.mrf.mxu1 }
 0x1cb   : > { %v737_v58 = vadd.f32 %v736_v56, %v2619_v37  ;;  %v1057_v59 = vadd.f32 %v1056_v57, %v2619_v37 }
 0x1cc   : > { %v738_v60 = vpop.f32.mrf.mxu0  ;;  %v1058_v61 = vpop.f32.mrf.mxu1 }
 0x1cd   : > { %1236 = vst.msk [vmem:[%s2629_s4 + $0x118] sm:$0xff] %vm1200_vm0, %v737_v58  ;;  %1300 = vst.msk [vmem:[%s2629_s4 + $0x318] sm:$0xff] %vm1200_vm0, %v1057_v59 }
 0x1ce   : > { %v741_v62 = vpop.f32.mrf.mxu0  ;;  %v1061_v63 = vpop.f32.mrf.mxu1 }
 0x1cf   : > { %v742_v0 = vadd.f32 %v741_v62, %v2619_v37  ;;  %v1062_v1 = vadd.f32 %v1061_v63, %v2619_v37 }
 0x1d0   : > { %v743_v2 = vpop.f32.mrf.mxu0  ;;  %v1063_v3 = vpop.f32.mrf.mxu1 }
 0x1d1   : > { %1237 = vst.msk [vmem:[%s2629_s4 + $0x120] sm:$0xff] %vm1200_vm0, %v742_v0  ;;  %1301 = vst.msk [vmem:[%s2629_s4 + $0x320] sm:$0xff] %vm1200_vm0, %v1062_v1 }
 0x1d2   : > { %v746_v4 = vpop.f32.mrf.mxu0  ;;  %v1066_v5 = vpop.f32.mrf.mxu1 }
 0x1d3   : > { %v747_v6 = vadd.f32 %v746_v4, %v2619_v37  ;;  %v1067_v7 = vadd.f32 %v1066_v5, %v2619_v37 }
 0x1d4   : > { %v748_v8 = vpop.f32.mrf.mxu0  ;;  %v1068_v9 = vpop.f32.mrf.mxu1 }
 0x1d5   : > { %1238 = vst.msk [vmem:[%s2629_s4 + $0x128] sm:$0xff] %vm1200_vm0, %v747_v6  ;;  %1302 = vst.msk [vmem:[%s2629_s4 + $0x328] sm:$0xff] %vm1200_vm0, %v1067_v7 }
 0x1d6   : > { %v751_v10 = vpop.f32.mrf.mxu0  ;;  %v1071_v11 = vpop.f32.mrf.mxu1 }
 0x1d7   : > { %v752_v12 = vadd.f32 %v751_v10, %v2619_v37  ;;  %v1072_v13 = vadd.f32 %v1071_v11, %v2619_v37 }
 0x1d8   : > { %v753_v14 = vpop.f32.mrf.mxu0  ;;  %v1073_v15 = vpop.f32.mrf.mxu1 }
 0x1d9   : > { %1239 = vst.msk [vmem:[%s2629_s4 + $0x130] sm:$0xff] %vm1200_vm0, %v752_v12  ;;  %1303 = vst.msk [vmem:[%s2629_s4 + $0x330] sm:$0xff] %vm1200_vm0, %v1072_v13 }
 0x1da   : > { %v756_v16 = vpop.f32.mrf.mxu0  ;;  %v1076_v17 = vpop.f32.mrf.mxu1 }
 0x1db   : > { %v757_v18 = vadd.f32 %v756_v16, %v2619_v37  ;;  %v1077_v19 = vadd.f32 %v1076_v17, %v2619_v37 }
 0x1dc   : > { %v758_v20 = vpop.f32.mrf.mxu0  ;;  %v1078_v21 = vpop.f32.mrf.mxu1 }
 0x1dd   : > { %1240 = vst.msk [vmem:[%s2629_s4 + $0x138] sm:$0xff] %vm1200_vm0, %v757_v18  ;;  %1304 = vst.msk [vmem:[%s2629_s4 + $0x338] sm:$0xff] %vm1200_vm0, %v1077_v19 }
 0x1de   : > { %v761_v22 = vpop.f32.mrf.mxu0  ;;  %v1081_v23 = vpop.f32.mrf.mxu1 }
 0x1df   : > { %v762_v24 = vadd.f32 %v761_v22, %v2619_v37  ;;  %v1082_v25 = vadd.f32 %v1081_v23, %v2619_v37 }
 0x1e0   : > { %v763_v26 = vpop.f32.mrf.mxu0  ;;  %v1083_v27 = vpop.f32.mrf.mxu1 }
 0x1e1   : > { %1241 = vst.msk [vmem:[%s2629_s4 + $0x140] sm:$0xff] %vm1200_vm0, %v762_v24  ;;  %1305 = vst.msk [vmem:[%s2629_s4 + $0x340] sm:$0xff] %vm1200_vm0, %v1082_v25 }
 0x1e2   : > { %v766_v28 = vpop.f32.mrf.mxu0  ;;  %v1086_v29 = vpop.f32.mrf.mxu1 }
 0x1e3   : > { %v767_v30 = vadd.f32 %v766_v28, %v2619_v37  ;;  %v1087_v31 = vadd.f32 %v1086_v29, %v2619_v37 }
 0x1e4   : > { %v768_v32 = vpop.f32.mrf.mxu0  ;;  %v1088_v33 = vpop.f32.mrf.mxu1 }
 0x1e5   : > { %1242 = vst.msk [vmem:[%s2629_s4 + $0x148] sm:$0xff] %vm1200_vm0, %v767_v30  ;;  %1306 = vst.msk [vmem:[%s2629_s4 + $0x348] sm:$0xff] %vm1200_vm0, %v1087_v31 }
 0x1e6   : > { %v771_v34 = vpop.f32.mrf.mxu0  ;;  %v1091_v35 = vpop.f32.mrf.mxu1 }
 0x1e7   : > { %v772_v36 = vadd.f32 %v771_v34, %v2619_v37  ;;  %v1092_v38 = vadd.f32 %v1091_v35, %v2619_v37 }
 0x1e8   : > { %v773_v39 = vpop.f32.mrf.mxu0  ;;  %v1093_v40 = vpop.f32.mrf.mxu1 }
 0x1e9   : > { %1243 = vst.msk [vmem:[%s2629_s4 + $0x150] sm:$0xff] %vm1200_vm0, %v772_v36  ;;  %1307 = vst.msk [vmem:[%s2629_s4 + $0x350] sm:$0xff] %vm1200_vm0, %v1092_v38 }
 0x1ea   : > { %v776_v41 = vpop.f32.mrf.mxu0  ;;  %v1096_v42 = vpop.f32.mrf.mxu1 }
 0x1eb   : > { %v777_v43 = vadd.f32 %v776_v41, %v2619_v37  ;;  %v1097_v44 = vadd.f32 %v1096_v42, %v2619_v37 }
 0x1ec   : > { %v778_v45 = vpop.f32.mrf.mxu0  ;;  %v1098_v46 = vpop.f32.mrf.mxu1 }
 0x1ed   : > { %1244 = vst.msk [vmem:[%s2629_s4 + $0x158] sm:$0xff] %vm1200_vm0, %v777_v43  ;;  %1308 = vst.msk [vmem:[%s2629_s4 + $0x358] sm:$0xff] %vm1200_vm0, %v1097_v44 }
 0x1ee   : > { %v781_v47 = vpop.f32.mrf.mxu0  ;;  %v1101_v48 = vpop.f32.mrf.mxu1 }
 0x1ef   : > { %v782_v49 = vadd.f32 %v781_v47, %v2619_v37  ;;  %v1102_v50 = vadd.f32 %v1101_v48, %v2619_v37 }
 0x1f0   : > { %v783_v51 = vpop.f32.mrf.mxu0  ;;  %v1103_v52 = vpop.f32.mrf.mxu1 }
 0x1f1   : > { %1245 = vst.msk [vmem:[%s2629_s4 + $0x160] sm:$0xff] %vm1200_vm0, %v782_v49  ;;  %1309 = vst.msk [vmem:[%s2629_s4 + $0x360] sm:$0xff] %vm1200_vm0, %v1102_v50 }
 0x1f2   : > { %v786_v53 = vpop.f32.mrf.mxu0  ;;  %v1106_v54 = vpop.f32.mrf.mxu1 }
 0x1f3   : > { %v787_v55 = vadd.f32 %v786_v53, %v2619_v37  ;;  %v1107_v56 = vadd.f32 %v1106_v54, %v2619_v37 }
 0x1f4   : > { %v788_v57 = vpop.f32.mrf.mxu0  ;;  %v1108_v58 = vpop.f32.mrf.mxu1 }
 0x1f5   : > { %1246 = vst.msk [vmem:[%s2629_s4 + $0x168] sm:$0xff] %vm1200_vm0, %v787_v55  ;;  %1310 = vst.msk [vmem:[%s2629_s4 + $0x368] sm:$0xff] %vm1200_vm0, %v1107_v56 }
 0x1f6   : > { %v791_v59 = vpop.f32.mrf.mxu0  ;;  %v1111_v60 = vpop.f32.mrf.mxu1 }
 0x1f7   : > { %v792_v61 = vadd.f32 %v791_v59, %v2619_v37  ;;  %v1112_v62 = vadd.f32 %v1111_v60, %v2619_v37 }
 0x1f8   : > { %v793_v63 = vpop.f32.mrf.mxu0  ;;  %v1113_v0 = vpop.f32.mrf.mxu1 }
 0x1f9   : > { %1247 = vst.msk [vmem:[%s2629_s4 + $0x170] sm:$0xff] %vm1200_vm0, %v792_v61  ;;  %1311 = vst.msk [vmem:[%s2629_s4 + $0x370] sm:$0xff] %vm1200_vm0, %v1112_v62 }
 0x1fa   : > { %v796_v1 = vpop.f32.mrf.mxu0  ;;  %v1116_v2 = vpop.f32.mrf.mxu1 }
 0x1fb   : > { %v797_v3 = vadd.f32 %v796_v1, %v2619_v37  ;;  %v1117_v4 = vadd.f32 %v1116_v2, %v2619_v37 }
 0x1fc   : > { %v798_v5 = vpop.f32.mrf.mxu0  ;;  %v1118_v6 = vpop.f32.mrf.mxu1 }
 0x1fd   : > { %1248 = vst.msk [vmem:[%s2629_s4 + $0x178] sm:$0xff] %vm1200_vm0, %v797_v3  ;;  %1312 = vst.msk [vmem:[%s2629_s4 + $0x378] sm:$0xff] %vm1200_vm0, %v1117_v4 }
 0x1fe   : > { %v801_v7 = vpop.f32.mrf.mxu0  ;;  %v1121_v8 = vpop.f32.mrf.mxu1 }
 0x1ff   : > { %v802_v9 = vadd.f32 %v801_v7, %v2619_v37  ;;  %v1122_v10 = vadd.f32 %v1121_v8, %v2619_v37 }
 0x200   : > { %v803_v11 = vpop.f32.mrf.mxu0  ;;  %v1123_v12 = vpop.f32.mrf.mxu1 }
 0x201   : > { %1249 = vst.msk [vmem:[%s2629_s4 + $0x180] sm:$0xff] %vm1200_vm0, %v802_v9  ;;  %1313 = vst.msk [vmem:[%s2629_s4 + $0x380] sm:$0xff] %vm1200_vm0, %v1122_v10 }
 0x202   : > { %v806_v13 = vpop.f32.mrf.mxu0  ;;  %v1126_v14 = vpop.f32.mrf.mxu1 }
 0x203   : > { %v807_v15 = vadd.f32 %v806_v13, %v2619_v37  ;;  %v1127_v16 = vadd.f32 %v1126_v14, %v2619_v37 }
 0x204   : > { %v808_v17 = vpop.f32.mrf.mxu0  ;;  %v1128_v18 = vpop.f32.mrf.mxu1 }
 0x205   : > { %1250 = vst.msk [vmem:[%s2629_s4 + $0x188] sm:$0xff] %vm1200_vm0, %v807_v15  ;;  %1314 = vst.msk [vmem:[%s2629_s4 + $0x388] sm:$0xff] %vm1200_vm0, %v1127_v16 }
 0x206   : > { %v811_v19 = vpop.f32.mrf.mxu0  ;;  %v1131_v20 = vpop.f32.mrf.mxu1 }
 0x207   : > { %v812_v21 = vadd.f32 %v811_v19, %v2619_v37  ;;  %v1132_v22 = vadd.f32 %v1131_v20, %v2619_v37 }
 0x208   : > { %v813_v23 = vpop.f32.mrf.mxu0  ;;  %v1133_v24 = vpop.f32.mrf.mxu1 }
 0x209   : > { %1251 = vst.msk [vmem:[%s2629_s4 + $0x190] sm:$0xff] %vm1200_vm0, %v812_v21  ;;  %1315 = vst.msk [vmem:[%s2629_s4 + $0x390] sm:$0xff] %vm1200_vm0, %v1132_v22 }
 0x20a   : > { %v816_v25 = vpop.f32.mrf.mxu0  ;;  %v1136_v26 = vpop.f32.mrf.mxu1 }
 0x20b   : > { %v817_v27 = vadd.f32 %v816_v25, %v2619_v37  ;;  %v1137_v28 = vadd.f32 %v1136_v26, %v2619_v37 }
 0x20c   : > { %v818_v29 = vpop.f32.mrf.mxu0  ;;  %v1138_v30 = vpop.f32.mrf.mxu1 }
 0x20d   : > { %1252 = vst.msk [vmem:[%s2629_s4 + $0x198] sm:$0xff] %vm1200_vm0, %v817_v27  ;;  %1316 = vst.msk [vmem:[%s2629_s4 + $0x398] sm:$0xff] %vm1200_vm0, %v1137_v28 }
 0x20e   : > { %v821_v31 = vpop.f32.mrf.mxu0  ;;  %v1141_v32 = vpop.f32.mrf.mxu1 }
 0x20f   : > { %v822_v33 = vadd.f32 %v821_v31, %v2619_v37  ;;  %v1142_v34 = vadd.f32 %v1141_v32, %v2619_v37 }
 0x210   : > { %v823_v35 = vpop.f32.mrf.mxu0  ;;  %v1143_v36 = vpop.f32.mrf.mxu1 }
 0x211   : > { %1253 = vst.msk [vmem:[%s2629_s4 + $0x1a0] sm:$0xff] %vm1200_vm0, %v822_v33  ;;  %1317 = vst.msk [vmem:[%s2629_s4 + $0x3a0] sm:$0xff] %vm1200_vm0, %v1142_v34 }
 0x212   : > { %v826_v38 = vpop.f32.mrf.mxu0  ;;  %v1146_v39 = vpop.f32.mrf.mxu1 }
 0x213   : > { %v827_v40 = vadd.f32 %v826_v38, %v2619_v37  ;;  %v1147_v41 = vadd.f32 %v1146_v39, %v2619_v37 }
 0x214   : > { %v828_v42 = vpop.f32.mrf.mxu0  ;;  %v1148_v43 = vpop.f32.mrf.mxu1 }
 0x215   : > { %1254 = vst.msk [vmem:[%s2629_s4 + $0x1a8] sm:$0xff] %vm1200_vm0, %v827_v40  ;;  %1318 = vst.msk [vmem:[%s2629_s4 + $0x3a8] sm:$0xff] %vm1200_vm0, %v1147_v41 }
 0x216   : > { %v831_v44 = vpop.f32.mrf.mxu0  ;;  %v1151_v45 = vpop.f32.mrf.mxu1 }
 0x217   : > { %v832_v46 = vadd.f32 %v831_v44, %v2619_v37  ;;  %v1152_v47 = vadd.f32 %v1151_v45, %v2619_v37 }
 0x218   : > { %v833_v48 = vpop.f32.mrf.mxu0  ;;  %v1153_v49 = vpop.f32.mrf.mxu1 }
 0x219   : > { %1255 = vst.msk [vmem:[%s2629_s4 + $0x1b0] sm:$0xff] %vm1200_vm0, %v832_v46  ;;  %1319 = vst.msk [vmem:[%s2629_s4 + $0x3b0] sm:$0xff] %vm1200_vm0, %v1152_v47 }
 0x21a   : > { %v836_v50 = vpop.f32.mrf.mxu0  ;;  %v1156_v51 = vpop.f32.mrf.mxu1 }
 0x21b   : > { %v837_v52 = vadd.f32 %v836_v50, %v2619_v37  ;;  %v1157_v53 = vadd.f32 %v1156_v51, %v2619_v37 }
 0x21c   : > { %v838_v54 = vpop.f32.mrf.mxu0  ;;  %v1158_v55 = vpop.f32.mrf.mxu1 }
 0x21d   : > { %1256 = vst.msk [vmem:[%s2629_s4 + $0x1b8] sm:$0xff] %vm1200_vm0, %v837_v52  ;;  %1320 = vst.msk [vmem:[%s2629_s4 + $0x3b8] sm:$0xff] %vm1200_vm0, %v1157_v53 }
 0x21e   : > { %v841_v56 = vpop.f32.mrf.mxu0  ;;  %v1161_v57 = vpop.f32.mrf.mxu1 }
 0x21f   : > { %v842_v58 = vadd.f32 %v841_v56, %v2619_v37  ;;  %v1162_v59 = vadd.f32 %v1161_v57, %v2619_v37 }
 0x220   : > { %v843_v60 = vpop.f32.mrf.mxu0  ;;  %v1163_v61 = vpop.f32.mrf.mxu1 }
 0x221   : > { %1257 = vst.msk [vmem:[%s2629_s4 + $0x1c0] sm:$0xff] %vm1200_vm0, %v842_v58  ;;  %1321 = vst.msk [vmem:[%s2629_s4 + $0x3c0] sm:$0xff] %vm1200_vm0, %v1162_v59 }
 0x222   : > { %v846_v62 = vpop.f32.mrf.mxu0  ;;  %v1166_v63 = vpop.f32.mrf.mxu1 }
 0x223   : > { %v847_v0 = vadd.f32 %v846_v62, %v2619_v37  ;;  %v1167_v1 = vadd.f32 %v1166_v63, %v2619_v37 }
 0x224   : > { %v848_v2 = vpop.f32.mrf.mxu0  ;;  %v1168_v3 = vpop.f32.mrf.mxu1 }
 0x225   : > { %1258 = vst.msk [vmem:[%s2629_s4 + $0x1c8] sm:$0xff] %vm1200_vm0, %v847_v0  ;;  %1322 = vst.msk [vmem:[%s2629_s4 + $0x3c8] sm:$0xff] %vm1200_vm0, %v1167_v1 }
 0x226   : > { %v851_v4 = vpop.f32.mrf.mxu0  ;;  %v1171_v5 = vpop.f32.mrf.mxu1 }
 0x227   : > { %v852_v6 = vadd.f32 %v851_v4, %v2619_v37  ;;  %v1172_v7 = vadd.f32 %v1171_v5, %v2619_v37 }
 0x228   : > { %v853_v8 = vpop.f32.mrf.mxu0  ;;  %v1173_v9 = vpop.f32.mrf.mxu1 }
 0x229   : > { %1259 = vst.msk [vmem:[%s2629_s4 + $0x1d0] sm:$0xff] %vm1200_vm0, %v852_v6  ;;  %1323 = vst.msk [vmem:[%s2629_s4 + $0x3d0] sm:$0xff] %vm1200_vm0, %v1172_v7 }
 0x22a   : > { %v856_v10 = vpop.f32.mrf.mxu0  ;;  %v1176_v11 = vpop.f32.mrf.mxu1 }
 0x22b   : > { %v857_v12 = vadd.f32 %v856_v10, %v2619_v37  ;;  %v1177_v13 = vadd.f32 %v1176_v11, %v2619_v37 }
 0x22c   : > { %v858_v14 = vpop.f32.mrf.mxu0  ;;  %v1178_v15 = vpop.f32.mrf.mxu1 }
 0x22d   : > { %1260 = vst.msk [vmem:[%s2629_s4 + $0x1d8] sm:$0xff] %vm1200_vm0, %v857_v12  ;;  %1324 = vst.msk [vmem:[%s2629_s4 + $0x3d8] sm:$0xff] %vm1200_vm0, %v1177_v13 }
 0x22e   : > { %v861_v16 = vpop.f32.mrf.mxu0  ;;  %v1181_v17 = vpop.f32.mrf.mxu1 }
 0x22f   : > { %v862_v18 = vadd.f32 %v861_v16, %v2619_v37  ;;  %v1182_v19 = vadd.f32 %v1181_v17, %v2619_v37 }
 0x230   : > { %v863_v20 = vpop.f32.mrf.mxu0  ;;  %v1183_v21 = vpop.f32.mrf.mxu1 }
 0x231   : > { %1261 = vst.msk [vmem:[%s2629_s4 + $0x1e0] sm:$0xff] %vm1200_vm0, %v862_v18  ;;  %1325 = vst.msk [vmem:[%s2629_s4 + $0x3e0] sm:$0xff] %vm1200_vm0, %v1182_v19 }
 0x232   : > { %v866_v22 = vpop.f32.mrf.mxu0  ;;  %v1186_v23 = vpop.f32.mrf.mxu1 }
 0x233   : > { %v867_v24 = vadd.f32 %v866_v22, %v2619_v37  ;;  %v1187_v25 = vadd.f32 %v1186_v23, %v2619_v37 }
 0x234   : > { %v868_v26 = vpop.f32.mrf.mxu0  ;;  %v1188_v27 = vpop.f32.mrf.mxu1 }
 0x235   : > { %1262 = vst.msk [vmem:[%s2629_s4 + $0x1e8] sm:$0xff] %vm1200_vm0, %v867_v24  ;;  %1326 = vst.msk [vmem:[%s2629_s4 + $0x3e8] sm:$0xff] %vm1200_vm0, %v1187_v25 }
 0x236   : > { %v871_v28 = vpop.f32.mrf.mxu0  ;;  %v1191_v29 = vpop.f32.mrf.mxu1 }
 0x237   : > { %v872_v30 = vadd.f32 %v871_v28, %v2619_v37  ;;  %v1192_v31 = vadd.f32 %v1191_v29, %v2619_v37 }
 0x238   : > { %v873_v32 = vpop.f32.mrf.mxu0  ;;  %v1193_v33 = vpop.f32.mrf.mxu1 }
 0x239   : > { %1263 = vst.msk [vmem:[%s2629_s4 + $0x1f0] sm:$0xff] %vm1200_vm0, %v872_v30  ;;  %1327 = vst.msk [vmem:[%s2629_s4 + $0x3f0] sm:$0xff] %vm1200_vm0, %v1192_v31  ;;  %1335 = sbr.rel (!%p2203_p8) target bundleno = 638 (0x27e), region = 40 }
 0x23a   : > { %v876_v34 = vpop.f32.mrf.mxu0  ;;  %v1196_v35 = vpop.f32.mrf.mxu1 }
 0x23b   : > { %v877_v36 = vadd.f32 %v876_v34, %v2619_v37  ;;  %v1197_v38 = vadd.f32 %v1196_v35, %v2619_v37 }
 0x23c   : > { %v878_v39 = vpop.f32.mrf.mxu0  ;;  %v1198_v40 = vpop.f32.mrf.mxu1 }
 0x23d   : > { %1264 = vst.msk [vmem:[%s2629_s4 + $0x1f8] sm:$0xff] %vm1200_vm0, %v877_v36  ;;  %1328 = vst.msk [vmem:[%s2629_s4 + $0x3f8] sm:$0xff] %vm1200_vm0, %v1197_v38 }
 0x23e   : > { %s3294_s11 = smov (!%p1338_p7, %s1337_s11), 128 }
 0x23f   : > { %s1825_s19 = sshll.u32 %s3294_s11, 7 }
 0x240   : > { %p1828_p11 = scmp.eq.s32.totalorder %s1825_s19, 0 }
 0x241   : > { %s3080_s23 = sshrl.u32 (!%p1828_p11), %s3294_s11, 6 }
 0x242   : > { %1346 = sbr.rel (%p1828_p11) target bundleno = 638 (0x27e), region = 44  ;;  %p1829_p8 = scmp.le.s32.totalorder (!%p1828_p11), %s3080_s23, 0 }
 0x247   : > { %1761 = sbr.rel (%p1829_p8) target bundleno = 621 (0x26d), region = 126  ;;  %s3282_s2 = smov (!%p1829_p8), %s3074_s14 }
 0x248   : > { %s3283_s20 = smov (!%p1829_p8), %s2629_s4  ;;  %s3089_s24 = smov (!%p1829_p8), 0  }
 0x249   : > { %s3091_s25 = smov (!%p1829_p8), 0  }
 0x24c LB: >> { %v1535_v37 = vld [vmem:[%s2110_s20] sm:$0xff]  ;;  %v1537_v41 = vld [vmem:[%s2110_s20 + $0x8] sm:$0xff]  ;;  %v1539_v42 = vld [vmem:[%s2110_s20 + $0x10] sm:$0xff]  ;;  %s1663_s26 = sadd.s32 1, %s2114_s24  ;;  %s1529_s25 = sadd.s32 1, %s2118_s25   ;;  %s2118_s25 = sphi %s3091_s25, %s1529_s25   ;;  %s2114_s24 = sphi %s3089_s24, %s3286_s24   ;;  %s2110_s20 = sphi %s3283_s20, %s3285_s20   ;;  %s2106_s2 = sphi %s3282_s2, %s3284_s2  }
 0x24d   : >> { %1536 = vst [vmem:[%s2106_s2] sm:$0xff] %v1535_v37  ;;  %1538 = vst [vmem:[%s2106_s2 + $0x8] sm:$0xff] %v1537_v41  ;;  %v1541_v43 = vld [vmem:[%s2110_s20 + $0x18] sm:$0xff]  ;;  %v1543_v44 = vld [vmem:[%s2110_s20 + $0x20] sm:$0xff]  ;;  %p1664_p4 = scmp.ge.s32.totalorder %s1663_s26, %s3080_s23  ;;  %p1528_p5 = scmp.ge.s32.totalorder %s1529_s25, %s3080_s23 }
 0x24e   : >> { %1540 = vst [vmem:[%s2106_s2 + $0x10] sm:$0xff] %v1539_v42  ;;  %v1545_v45 = vld [vmem:[%s2110_s20 + $0x28] sm:$0xff]  ;;  %1542 = vst [vmem:[%s2106_s2 + $0x18] sm:$0xff] %v1541_v43  ;;  %v1547_v46 = vld [vmem:[%s2110_s20 + $0x30] sm:$0xff] }
 0x24f   : >> { %1544 = vst [vmem:[%s2106_s2 + $0x20] sm:$0xff] %v1543_v44  ;;  %1546 = vst [vmem:[%s2106_s2 + $0x28] sm:$0xff] %v1545_v45  ;;  %v1549_v47 = vld [vmem:[%s2110_s20 + $0x38] sm:$0xff]  ;;  %v1551_v48 = vld [vmem:[%s2110_s20 + $0x40] sm:$0xff]  ;;  %s3296_s26 = smov (%p1664_p4, %s1663_s26), 0 }
 0x250   : >> { %1548 = vst [vmem:[%s2106_s2 + $0x30] sm:$0xff] %v1547_v46  ;;  %1550 = vst [vmem:[%s2106_s2 + $0x38] sm:$0xff] %v1549_v47  ;;  %v1553_v49 = vld [vmem:[%s2110_s20 + $0x48] sm:$0xff]  ;;  %v1555_v50 = vld [vmem:[%s2110_s20 + $0x50] sm:$0xff]  ;;  %s1830_s27 = sshll.u32 %s3296_s26, 9  ;;  %s3286_s24 = smov %s3296_s26 }
 0x251   : >> { %1552 = vst [vmem:[%s2106_s2 + $0x40] sm:$0xff] %v1551_v48  ;;  %v1557_v51 = vld [vmem:[%s2110_s20 + $0x58] sm:$0xff]  ;;  %1554 = vst [vmem:[%s2106_s2 + $0x48] sm:$0xff] %v1553_v49  ;;  %v1559_v52 = vld [vmem:[%s2110_s20 + $0x60] sm:$0xff]  ;;  %s3147_s29 = scalar_lea.vmem %s2629_s4, %s1830_s27 [#allocation5]   ;;  %s3150_s5 = scalar_lea.vmem %s3074_s14, %s1830_s27  }
 0x252   : >> { %1556 = vst [vmem:[%s2106_s2 + $0x50] sm:$0xff] %v1555_v50  ;;  %1558 = vst [vmem:[%s2106_s2 + $0x58] sm:$0xff] %v1557_v51  ;;  %v1561_v53 = vld [vmem:[%s2110_s20 + $0x68] sm:$0xff]  ;;  %v1563_v54 = vld [vmem:[%s2110_s20 + $0x70] sm:$0xff] }
 0x253   : >> { %1560 = vst [vmem:[%s2106_s2 + $0x60] sm:$0xff] %v1559_v52  ;;  %1562 = vst [vmem:[%s2106_s2 + $0x68] sm:$0xff] %v1561_v53  ;;  %v1565_v55 = vld [vmem:[%s2110_s20 + $0x78] sm:$0xff]  ;;  %v1567_v56 = vld [vmem:[%s2110_s20 + $0x80] sm:$0xff] }
 0x254   : >> { %1564 = vst [vmem:[%s2106_s2 + $0x70] sm:$0xff] %v1563_v54  ;;  %v1569_v57 = vld [vmem:[%s2110_s20 + $0x88] sm:$0xff]  ;;  %1566 = vst [vmem:[%s2106_s2 + $0x78] sm:$0xff] %v1565_v55  ;;  %v1571_v58 = vld [vmem:[%s2110_s20 + $0x90] sm:$0xff] }
 0x255   : >> { %1568 = vst [vmem:[%s2106_s2 + $0x80] sm:$0xff] %v1567_v56  ;;  %1570 = vst [vmem:[%s2106_s2 + $0x88] sm:$0xff] %v1569_v57  ;;  %v1573_v59 = vld [vmem:[%s2110_s20 + $0x98] sm:$0xff]  ;;  %v1575_v60 = vld [vmem:[%s2110_s20 + $0xa0] sm:$0xff] }
 0x256   : >> { %1572 = vst [vmem:[%s2106_s2 + $0x90] sm:$0xff] %v1571_v58  ;;  %1574 = vst [vmem:[%s2106_s2 + $0x98] sm:$0xff] %v1573_v59  ;;  %v1577_v61 = vld [vmem:[%s2110_s20 + $0xa8] sm:$0xff]  ;;  %v1579_v62 = vld [vmem:[%s2110_s20 + $0xb0] sm:$0xff] }
 0x257   : >> { %1576 = vst [vmem:[%s2106_s2 + $0xa0] sm:$0xff] %v1575_v60  ;;  %v1581_v63 = vld [vmem:[%s2110_s20 + $0xb8] sm:$0xff]  ;;  %1578 = vst [vmem:[%s2106_s2 + $0xa8] sm:$0xff] %v1577_v61  ;;  %v1583_v0 = vld [vmem:[%s2110_s20 + $0xc0] sm:$0xff] }
 0x258   : >> { %1580 = vst [vmem:[%s2106_s2 + $0xb0] sm:$0xff] %v1579_v62  ;;  %1582 = vst [vmem:[%s2106_s2 + $0xb8] sm:$0xff] %v1581_v63  ;;  %v1585_v1 = vld [vmem:[%s2110_s20 + $0xc8] sm:$0xff]  ;;  %v1587_v2 = vld [vmem:[%s2110_s20 + $0xd0] sm:$0xff] }
 0x259   : >> { %1584 = vst [vmem:[%s2106_s2 + $0xc0] sm:$0xff] %v1583_v0  ;;  %1586 = vst [vmem:[%s2106_s2 + $0xc8] sm:$0xff] %v1585_v1  ;;  %v1589_v3 = vld [vmem:[%s2110_s20 + $0xd8] sm:$0xff]  ;;  %v1591_v4 = vld [vmem:[%s2110_s20 + $0xe0] sm:$0xff] }
 0x25a   : >> { %1588 = vst [vmem:[%s2106_s2 + $0xd0] sm:$0xff] %v1587_v2  ;;  %v1593_v5 = vld [vmem:[%s2110_s20 + $0xe8] sm:$0xff]  ;;  %1590 = vst [vmem:[%s2106_s2 + $0xd8] sm:$0xff] %v1589_v3  ;;  %v1595_v6 = vld [vmem:[%s2110_s20 + $0xf0] sm:$0xff] }
 0x25b   : >> { %1592 = vst [vmem:[%s2106_s2 + $0xe0] sm:$0xff] %v1591_v4  ;;  %1594 = vst [vmem:[%s2106_s2 + $0xe8] sm:$0xff] %v1593_v5  ;;  %v1597_v7 = vld [vmem:[%s2110_s20 + $0xf8] sm:$0xff]  ;;  %v1599_v8 = vld [vmem:[%s2110_s20 + $0x100] sm:$0xff] }
 0x25c   : >> { %1596 = vst [vmem:[%s2106_s2 + $0xf0] sm:$0xff] %v1595_v6  ;;  %1598 = vst [vmem:[%s2106_s2 + $0xf8] sm:$0xff] %v1597_v7  ;;  %v1601_v9 = vld [vmem:[%s2110_s20 + $0x108] sm:$0xff]  ;;  %v1603_v10 = vld [vmem:[%s2110_s20 + $0x110] sm:$0xff] }
 0x25d   : >> { %1600 = vst [vmem:[%s2106_s2 + $0x100] sm:$0xff] %v1599_v8  ;;  %v1605_v11 = vld [vmem:[%s2110_s20 + $0x118] sm:$0xff]  ;;  %1602 = vst [vmem:[%s2106_s2 + $0x108] sm:$0xff] %v1601_v9  ;;  %v1607_v12 = vld [vmem:[%s2110_s20 + $0x120] sm:$0xff] }
 0x25e   : >> { %1604 = vst [vmem:[%s2106_s2 + $0x110] sm:$0xff] %v1603_v10  ;;  %1606 = vst [vmem:[%s2106_s2 + $0x118] sm:$0xff] %v1605_v11  ;;  %v1609_v13 = vld [vmem:[%s2110_s20 + $0x128] sm:$0xff]  ;;  %v1611_v14 = vld [vmem:[%s2110_s20 + $0x130] sm:$0xff] }
 0x25f   : >> { %1608 = vst [vmem:[%s2106_s2 + $0x120] sm:$0xff] %v1607_v12  ;;  %1610 = vst [vmem:[%s2106_s2 + $0x128] sm:$0xff] %v1609_v13  ;;  %v1613_v15 = vld [vmem:[%s2110_s20 + $0x138] sm:$0xff]  ;;  %v1615_v16 = vld [vmem:[%s2110_s20 + $0x140] sm:$0xff] }
 0x260   : >> { %1612 = vst [vmem:[%s2106_s2 + $0x130] sm:$0xff] %v1611_v14  ;;  %v1617_v17 = vld [vmem:[%s2110_s20 + $0x148] sm:$0xff]  ;;  %1614 = vst [vmem:[%s2106_s2 + $0x138] sm:$0xff] %v1613_v15  ;;  %v1619_v18 = vld [vmem:[%s2110_s20 + $0x150] sm:$0xff] }
 0x261   : >> { %1616 = vst [vmem:[%s2106_s2 + $0x140] sm:$0xff] %v1615_v16  ;;  %1618 = vst [vmem:[%s2106_s2 + $0x148] sm:$0xff] %v1617_v17  ;;  %v1621_v19 = vld [vmem:[%s2110_s20 + $0x158] sm:$0xff]  ;;  %v1623_v20 = vld [vmem:[%s2110_s20 + $0x160] sm:$0xff] }
 0x262   : >> { %1620 = vst [vmem:[%s2106_s2 + $0x150] sm:$0xff] %v1619_v18  ;;  %1622 = vst [vmem:[%s2106_s2 + $0x158] sm:$0xff] %v1621_v19  ;;  %v1625_v21 = vld [vmem:[%s2110_s20 + $0x168] sm:$0xff]  ;;  %v1627_v22 = vld [vmem:[%s2110_s20 + $0x170] sm:$0xff] }
 0x263   : >> { %1624 = vst [vmem:[%s2106_s2 + $0x160] sm:$0xff] %v1623_v20  ;;  %v1629_v23 = vld [vmem:[%s2110_s20 + $0x178] sm:$0xff]  ;;  %1626 = vst [vmem:[%s2106_s2 + $0x168] sm:$0xff] %v1625_v21  ;;  %v1631_v24 = vld [vmem:[%s2110_s20 + $0x180] sm:$0xff] }
 0x264   : >> { %1628 = vst [vmem:[%s2106_s2 + $0x170] sm:$0xff] %v1627_v22  ;;  %1630 = vst [vmem:[%s2106_s2 + $0x178] sm:$0xff] %v1629_v23  ;;  %v1633_v25 = vld [vmem:[%s2110_s20 + $0x188] sm:$0xff]  ;;  %v1635_v26 = vld [vmem:[%s2110_s20 + $0x190] sm:$0xff] }
 0x265   : >> { %1632 = vst [vmem:[%s2106_s2 + $0x180] sm:$0xff] %v1631_v24  ;;  %1634 = vst [vmem:[%s2106_s2 + $0x188] sm:$0xff] %v1633_v25  ;;  %v1637_v27 = vld [vmem:[%s2110_s20 + $0x198] sm:$0xff]  ;;  %v1639_v28 = vld [vmem:[%s2110_s20 + $0x1a0] sm:$0xff] }
 0x266   : >> { %1636 = vst [vmem:[%s2106_s2 + $0x190] sm:$0xff] %v1635_v26  ;;  %v1641_v29 = vld [vmem:[%s2110_s20 + $0x1a8] sm:$0xff]  ;;  %1638 = vst [vmem:[%s2106_s2 + $0x198] sm:$0xff] %v1637_v27  ;;  %v1643_v30 = vld [vmem:[%s2110_s20 + $0x1b0] sm:$0xff] }
 0x267   : >> { %1640 = vst [vmem:[%s2106_s2 + $0x1a0] sm:$0xff] %v1639_v28  ;;  %1642 = vst [vmem:[%s2106_s2 + $0x1a8] sm:$0xff] %v1641_v29  ;;  %v1645_v31 = vld [vmem:[%s2110_s20 + $0x1b8] sm:$0xff]  ;;  %v1647_v32 = vld [vmem:[%s2110_s20 + $0x1c0] sm:$0xff] }
 0x268   : >> { %1644 = vst [vmem:[%s2106_s2 + $0x1b0] sm:$0xff] %v1643_v30  ;;  %1646 = vst [vmem:[%s2106_s2 + $0x1b8] sm:$0xff] %v1645_v31  ;;  %v1649_v33 = vld [vmem:[%s2110_s20 + $0x1c8] sm:$0xff]  ;;  %v1651_v34 = vld [vmem:[%s2110_s20 + $0x1d0] sm:$0xff]  ;;  %1531 = sbr.rel (!%p1528_p5) target bundleno = 588 (0x24c), region = 132 }
 0x269   : >> { %1648 = vst [vmem:[%s2106_s2 + $0x1c0] sm:$0xff] %v1647_v32  ;;  %v1653_v35 = vld [vmem:[%s2110_s20 + $0x1d8] sm:$0xff]  ;;  %1650 = vst [vmem:[%s2106_s2 + $0x1c8] sm:$0xff] %v1649_v33  ;;  %v1655_v36 = vld [vmem:[%s2110_s20 + $0x1e0] sm:$0xff] }
 0x26a   : >> { %1652 = vst [vmem:[%s2106_s2 + $0x1d0] sm:$0xff] %v1651_v34  ;;  %1654 = vst [vmem:[%s2106_s2 + $0x1d8] sm:$0xff] %v1653_v35  ;;  %v1657_v38 = vld [vmem:[%s2110_s20 + $0x1e8] sm:$0xff]  ;;  %v1659_v39 = vld [vmem:[%s2110_s20 + $0x1f0] sm:$0xff] }
 0x26b   : >> { %1656 = vst [vmem:[%s2106_s2 + $0x1e0] sm:$0xff] %v1655_v36  ;;  %1658 = vst [vmem:[%s2106_s2 + $0x1e8] sm:$0xff] %v1657_v38  ;;  %v1661_v40 = vld [vmem:[%s2110_s20 + $0x1f8] sm:$0xff]  ;;  %s3285_s20 = smov %s3147_s29 }
 0x26c   : >> { %1660 = vst [vmem:[%s2106_s2 + $0x1f0] sm:$0xff] %v1659_v39  ;;  %1662 = vst [vmem:[%s2106_s2 + $0x1f8] sm:$0xff] %v1661_v40  ;;  %s3284_s2 = smov %s3150_s5 }
 0x26d PF: > { %s3255_s6 = sand.u32 63, %s3294_s11   ;;  %s1844_s17 = sshll.u32 %s3080_s23, 9 }
 0x26e   : > { %s1674_s28 = scalar_lea.vmem %s2629_s4, %s1844_s17 [#allocation5]   ;;  %s1676_s30 = scalar_lea.vmem %s3074_s14, %s1844_s17  }
 0x26f   : > { %p1835_p6 = scmp.le.s32.totalorder %s3255_s6, 0 }
 0x270   : > { %s2120_s8 = smov (!%p1835_p6), %s1676_s30   ;;  %s2124_s22 = smov (!%p1835_p6), %s1674_s28  }
 0x271   : > { %1775 = sbr.rel (%p1835_p6) target bundleno = 638 (0x27e), region = 137  ;;  %s2128_s9 = smov (!%p1835_p6), 0  }
 0x272   : > { %s2132_s7 = smov (!%p1835_p6), 0  }
 0x276 LB: >> { %v1686_v37 = vld [vmem:[%s2126_s22] sm:$0xff]  ;;  %s1688_s10 = sadd.s32 1, %s2130_s9  ;;  %s1680_s7 = sadd.s32 1, %s2134_s7   ;;  %s2134_s7 = sphi %s2132_s7, %s1680_s7   ;;  %s2130_s9 = sphi %s2128_s9, %s2129_s9   ;;  %s2126_s22 = sphi %s2124_s22, %s1693_s22   ;;  %s2122_s8 = sphi %s2120_s8, %s1694_s8  }
 0x277   : >> { %1687 = vst [vmem:[%s2122_s8] sm:$0xff] %v1686_v37  ;;  %p1689_p9 = scmp.ge.s32.totalorder %s1688_s10, %s3255_s6  ;;  %p1679_p10 = scmp.ge.s32.totalorder %s1680_s7, %s3255_s6 }
 0x279   : >> { %s3298_s10 = smov (%p1689_p9, %s1688_s10), 0  ;;  %1682 = sbr.rel (!%p1679_p10) target bundleno = 630 (0x276), region = 143 }
 0x27a   : >> { %s1836_s4 = sshll.u32 %s3298_s10, 3  ;;  %s2129_s9 = smov %s3298_s10  }
 0x27b   : >> { %s1693_s22 = scalar_lea.vmem %s1674_s28, %s1836_s4 [#allocation5]   ;;  %s1694_s8 = scalar_lea.vmem %s1676_s30, %s1836_s4  }
 0x27e PF: > { %p14_p12 = scmp.ge.s32.totalorder %s2185_s18, 8   ;;  %s3287_s14 = smov %s2094_s15 }
 0x27f   : > { %s3288_s15 = smov %s2098_s16  ;;  %s3289_s16 = smov %s2195_s21 }
 0x280   : > { %s3290_s17 = smov %s2185_s18  ;;  %16 = sbr.rel (!%p14_p12) target bundleno = 5 (0x5), region = 154 }
 0x285   :  { %1710 = vsyncpa [#allocation4], 1 }
 0x286   :  { %1712 = vsyncpa [#allocation4 + $0x1], 1 }

</bundles_post_ra>
